<compile_context>
chip_gen: v7x
topology: tpu7x:2x2x1
jax: 0.10.0
libtpu: 0.0.40
codegen_flags: <defaults>
</compile_context>

<pallas_src>
import functools
import math

import jax
import jax.numpy as jnp
from jax import lax
from jax.experimental import pallas as pl
from jax.experimental.pallas import tpu as pltpu

NEG_INIT = -1e30   # finite init for the running max (never -inf here)


def _round_up(x, m):
    return ((x + m - 1) // m) * m


def _mm(a, b):
    """a @ b on the MXU (contract last of a with first of b), f32 accumulate."""
    return lax.dot_general(a, b, dimension_numbers=(((1,), (0,)), ((), ())),
                           preferred_element_type=jnp.float32)


def _mm_t(a, b):
    """a @ b.T on the MXU without materializing a transpose."""
    return lax.dot_general(a, b, dimension_numbers=(((1,), (1,)), ((), ())),
                           preferred_element_type=jnp.float32)


def _block_diag(mats):
    """(n_heads, d_k, d_k) -> (n_heads*d_k, n_heads*d_k) block-diagonal."""
    n_h, dk, _ = mats.shape
    out = jnp.zeros((n_h * dk, n_h * dk), mats.dtype)
    for hh in range(n_h):
        out = out.at[hh * dk:(hh + 1) * dk, hh * dk:(hh + 1) * dk].set(mats[hh])
    return out


def _default_tiles(n_heads):
    """Per-generation tile caps (dst rows, src cols)."""
    try:
        kind = jax.devices()[0].device_kind.lower()
    except Exception:
        kind = ""
    if ("v5 lite" in kind) or ("v5e" in kind) or ("v5lite" in kind):
        dst_cap, src_cap = 128, 512          # 128-wide MXU, 16 MiB scoped VMEM default
    else:                                     # v6e / v7x (and unknown)
        dst_cap, src_cap = 256, 1024
    # keep the head-stacked (n_heads*dst_tile, src_tile) temporaries bounded
    dst_cap = max(16, min(dst_cap, (1024 // max(n_heads, 1)) // 16 * 16))
    return dst_cap, src_cap


# ---------------------------------------------------------------------------
# Fused HGT layer kernel (one pallas_call per destination node type)
# ---------------------------------------------------------------------------
def hgt_fused_kernel(occ_ref, alpha_ref, hdst_ref, k_ref, v_ref, mask_ref,
                     hm_ref, wq_ref, bq_ref, wa_ref, ba_ref, gam_ref, bet_ref,
                     out_ref,
                     qst_sc, acc_sc, o_sc, m_sc, l_sc,
                     *, n_heads, dst_tile, inv_n_rel, use_norm, ln_eps):
    d = pl.program_id(0)          # dst tile ("parallel")
    r = pl.program_id(1)          # relation (reduction, "arbitrary")
    s = pl.program_id(2)          # src tile (reduction, "arbitrary")
    n_d = pl.num_programs(0)
    n_r = pl.num_programs(1)
    n_s = pl.num_programs(2)

    # ---- once per dst tile: Q linear (f32) -> head-stacked bf16 copy; zero
    #      the cross-relation accumulator.
    @pl.when(jnp.logical_and(r == 0, s == 0))
    def _():
        q = _mm(hdst_ref[...], wq_ref[...]) + bq_ref[...]            # (Td, out)
        for hh in range(n_heads):                                    # static
            qst_sc[hh * dst_tile:(hh + 1) * dst_tile, :] = (
                q * hm_ref[hh]).astype(jnp.bfloat16)
        acc_sc[...] = jnp.zeros_like(acc_sc)

    # ---- once per relation: reset the online-softmax state (all heads).
    @pl.when(s == 0)
    def _():
        m_sc[...] = jnp.full_like(m_sc, NEG_INIT)
        l_sc[...] = jnp.zeros_like(l_sc)
        o_sc[...] = jnp.zeros_like(o_sc)

    # ---- block-sparse skip: empty / fully padded (relation, dst, src) tiles
    #      do no compute at all.
    #      TODO(synk): a data-dependent index_map could also skip their DMAs.
    occ = occ_ref[(r * n_d + d) * n_s + s]

    @pl.when(occ > 0)
    def _():
        k_t = k_ref[0]                                     # (Ts, out) bf16
        v_t = v_ref[0]                                     # (Ts, out) bf16
        maskf = mask_ref[0].astype(jnp.float32)            # (Td, Ts), 0/1

        # one head-stacked score matmul on the MXU (bf16 x bf16 -> f32):
        # row block h of qst_sc holds q with only head-h feature columns kept,
        # so s2[h*Td:(h+1)*Td] == per-head logits (pri/sqrt(d_k) folded into K).
        s2 = _mm_t(qst_sc[...], k_t)                       # (H*Td, Ts)

        # fused online-softmax update for all heads at once. The unmasked max
        # is still a valid upper bound; masking happens once on p below.
        m_prev = m_sc[...]                                 # (H*Td, 1)
        m_new = jnp.maximum(m_prev, jnp.max(s2, axis=1, keepdims=True))
        a2 = jnp.exp(m_prev - m_new)                       # (H*Td, 1)
        mask2 = jnp.concatenate([maskf] * n_heads, axis=0)  # (H*Td, Ts)
        p2 = jnp.exp(s2 - m_new) * mask2                   # (H*Td, Ts)
        l_sc[...] = a2 * l_sc[...] + jnp.sum(p2, axis=1, keepdims=True)
        m_sc[...] = m_new

        pv2 = _mm(p2.astype(jnp.bfloat16), v_t)            # (H*Td, out)

        # fold the head-stacked rows back into lane-dense per-head columns.
        corr = None
        pv = None
        for hh in range(n_heads):                          # tiny (Td, out) ops
            rs = slice(hh * dst_tile, (hh + 1) * dst_tile)
            c_h = a2[rs, :] * hm_ref[hh]                   # (Td, out)
            p_h = pv2[rs, :] * hm_ref[hh]
            corr = c_h if corr is None else corr + c_h
            pv = p_h if pv is None else pv + p_h
        o_sc[...] = o_sc[...] * corr + pv

    # ---- finalize this relation: per-head 1/l normalization, accumulate for
    #      the cross-relation mean (off the O(N^2) path).
    @pl.when(s == n_s - 1)
    def _():
        inv_l = pl.reciprocal(jnp.maximum(l_sc[...], 1e-30), approx=False)
        norm = None
        for hh in range(n_heads):
            n_h = inv_l[hh * dst_tile:(hh + 1) * dst_tile, :] * hm_ref[hh]
            norm = n_h if norm is None else norm + n_h
        acc_sc[...] += o_sc[...] * norm

    # ---- epilogue: cross_reducer='mean', a_linear, sigmoid-skip blend,
    #      LayerNorm; one lane-dense full-width store of the output block.
    @pl.when(jnp.logical_and(r == n_r - 1, s == n_s - 1))
    def _():
        alpha = alpha_ref[...]                             # (1, 1)
        t_mean = acc_sc[...] * inv_n_rel
        trans = _mm(t_mean, wa_ref[...]) + ba_ref[...]
        # TODO(synk): nn.Dropout(0.2) is the identity in eval mode.
        res = trans * alpha + hdst_ref[...] * (1.0 - alpha)
        if use_norm:
            mu = jnp.mean(res, axis=1, keepdims=True)
            var = jnp.mean(jnp.square(res - mu), axis=1, keepdims=True)
            res = (res - mu) * lax.rsqrt(var + ln_eps) * gam_ref[...] + bet_ref[...]
        out_ref[...] = res


def _hgt_dst_call(occ, alpha, h_dst, k_eff, v_eff, mask_stack, head_mask,
                  wq_t, bq, wa_t, ba, gamma, beta,
                  *, n_heads, dst_tile, src_tile, use_norm, ln_eps):
    n_rel, n_src_p, out_dim = k_eff.shape
    n_dst_p, in_dim = h_dst.shape
    assert in_dim == out_dim, "HGT residual requires in_dim == out_dim"
    grid = (n_dst_p // dst_tile, n_rel, n_src_p // src_tile)

    kernel = functools.partial(
        hgt_fused_kernel, n_heads=n_heads, dst_tile=dst_tile,
        inv_n_rel=1.0 / n_rel, use_norm=use_norm, ln_eps=ln_eps)

    grid_spec = pltpu.PrefetchScalarGridSpec(
        num_scalar_prefetch=1,                                 # occupancy -> SMEM
        grid=grid,
        in_specs=[
            pl.BlockSpec((1, 1), lambda d, r, s, occ: (0, 0)),                      # alpha
            pl.BlockSpec((dst_tile, in_dim), lambda d, r, s, occ: (d, 0)),           # h_dst
            pl.BlockSpec((1, src_tile, out_dim), lambda d, r, s, occ: (r, s, 0)),    # K_eff (bf16)
            pl.BlockSpec((1, src_tile, out_dim), lambda d, r, s, occ: (r, s, 0)),    # V_eff (bf16)
            pl.BlockSpec((1, dst_tile, src_tile), lambda d, r, s, occ: (r, d, s)),   # mask (bf16)
            pl.BlockSpec((n_heads, 1, out_dim), lambda d, r, s, occ: (0, 0, 0)),     # head mask
            pl.BlockSpec((in_dim, out_dim), lambda d, r, s, occ: (0, 0)),            # Wq^T
            pl.BlockSpec((1, out_dim), lambda d, r, s, occ: (0, 0)),                 # bq
            pl.BlockSpec((out_dim, out_dim), lambda d, r, s, occ: (0, 0)),           # Wa^T
            pl.BlockSpec((1, out_dim), lambda d, r, s, occ: (0, 0)),                 # ba
            pl.BlockSpec((1, out_dim), lambda d, r, s, occ: (0, 0)),                 # LN gamma
            pl.BlockSpec((1, out_dim), lambda d, r, s, occ: (0, 0)),                 # LN beta
        ],
        out_specs=pl.BlockSpec((dst_tile, out_dim), lambda d, r, s, occ: (d, 0)),
        scratch_shapes=[
            pltpu.VMEM((n_heads * dst_tile, out_dim), jnp.bfloat16),  # head-stacked q
            pltpu.VMEM((dst_tile, out_dim), jnp.float32),             # cross-relation acc
            pltpu.VMEM((dst_tile, out_dim), jnp.float32),             # softmax numerator
            pltpu.VMEM((n_heads * dst_tile, 1), jnp.float32),         # running max
            pltpu.VMEM((n_heads * dst_tile, 1), jnp.float32),         # running sum
        ])

    return pl.pallas_call(
        kernel,
        out_shape=jax.ShapeDtypeStruct((n_dst_p, out_dim), jnp.float32),
        grid_spec=grid_spec,
        compiler_params=pltpu.CompilerParams(
            dimension_semantics=("parallel", "arbitrary", "arbitrary"),
            vmem_limit_bytes=48 * 1024 * 1024),
    )(occ, alpha, h_dst, k_eff, v_eff, mask_stack, head_mask,
      wq_t, bq, wa_t, ba, gamma, beta)


def hgt_layer_forward(params, node_dict, edge_dict, masks, h, *, n_heads, d_k,
                      dst_tile=None, src_tile=None, use_norm=True, ln_eps=1e-5):
    """HGTLayer.forward on a dense-adjacency heterograph (eval mode)."""
    out_dim = n_heads * d_k
    sqrt_dk = math.sqrt(d_k)
    dst_cap, src_cap = _default_tiles(n_heads)
    if dst_tile is not None:
        dst_cap = dst_tile
    if src_tile is not None:
        src_cap = src_tile

    rels_by_dst = {nt: [] for nt in node_dict}
    for ce, e_id in edge_dict.items():
        rels_by_dst[ce[2]].append((ce, e_id))

    head_eye = jnp.repeat(jnp.eye(n_heads, dtype=jnp.float32), d_k, axis=1)  # (H, out)
    head_mask = head_eye[:, None, :]                                          # (H, 1, out)

    new_h = {}
    for nt, n_id in node_dict.items():
        rels = rels_by_dst[nt]
        if not rels:
            raise ValueError(f"node type {nt!r} has no incoming relations")
        n_dst, in_dim = h[nt].shape

        # tile sizes: big, but keep >=2 dst blocks when possible (v7x megacore)
        dt = max(16, min(dst_cap, _round_up(-(-n_dst // 2), 16)))
        max_src = max(h[ce[0]].shape[0] for ce, _ in rels)
        st = min(src_cap, _round_up(max_src, 128))
        n_dst_p = _round_up(n_dst, dt)
        n_src_p = _round_up(max_src, st)
        n_d_t, n_s_t = n_dst_p // dt, n_src_p // st

        h_dst = jnp.zeros((n_dst_p, in_dim), jnp.float32).at[:n_dst].set(h[nt])

        k_list, v_list, mask_list, occ_list = [], [], [], []
        for (src, et, dst), e_id in rels:
            s_id = node_dict[src]
            n_src = h[src].shape[0]
            h_src = jnp.zeros((n_src_p, in_dim), jnp.float32).at[:n_src].set(h[src])
            bd_att = _block_diag(params["relation_att"][e_id])
            bd_msg = _block_diag(params["relation_msg"][e_id])
            pri_row = jnp.repeat(params["relation_pri"][e_id] / sqrt_dk, d_k)
            # K/V projections, relation compose and pri/sqrt(d_k) done once per
            # relation with plain XLA matmuls (O(N d^2)); streamed as bf16.
            k_eff = ((h_src @ params["wk"][s_id].T + params["bk"][s_id]) @ bd_att) * pri_row
            v_eff = (h_src @ params["wv"][s_id].T + params["bv"][s_id]) @ bd_msg
            k_list.append(k_eff.astype(jnp.bfloat16))
            v_list.append(v_eff.astype(jnp.bfloat16))
            m_pad = (jnp.zeros((n_dst_p, n_src_p), jnp.float32)
                     .at[:n_dst, :n_src].set(masks[(src, et, dst)]))
            mask_list.append(m_pad.astype(jnp.bfloat16))       # exact 0/1, half the bytes
            occ_list.append(
                (m_pad.reshape(n_d_t, dt, n_s_t, st).sum(axis=(1, 3)) > 0)
                .astype(jnp.int32))

        k_eff = jnp.stack(k_list)                              # (n_rel, n_src_p, out) bf16
        v_eff = jnp.stack(v_list)
        mask_stack = jnp.stack(mask_list)                      # (n_rel, n_dst_p, n_src_p) bf16
        occ = jnp.stack(occ_list).reshape(-1)                  # (n_rel*n_d_t*n_s_t,) i32

        alpha = jax.nn.sigmoid(params["skip"][n_id]).reshape(1, 1).astype(jnp.float32)
        wq_t = params["wq"][n_id].T
        bq = params["bq"][n_id][None, :]
        wa_t = params["wa"][n_id].T
        ba = params["ba"][n_id][None, :]
        if use_norm:
            gamma = params["ln_g"][n_id][None, :]
            beta = params["ln_b"][n_id][None, :]
        else:
            gamma = jnp.ones((1, out_dim), jnp.float32)
            beta = jnp.zeros((1, out_dim), jnp.float32)

        out_p = _hgt_dst_call(occ, alpha, h_dst, k_eff, v_eff, mask_stack,
                              head_mask, wq_t, bq, wa_t, ba, gamma, beta,
                              n_heads=n_heads, dst_tile=dt, src_tile=st,
                              use_norm=use_norm, ln_eps=ln_eps)
        new_h[nt] = out_p[:n_dst]
    return new_h


# ---------------------------------------------------------------------------
# Row-tiled linear (+ optional GELU) kernel for adapt_ws / classify
# ---------------------------------------------------------------------------
def linear_kernel(x_ref, w_ref, b_ref, o_ref, *, act):
    y = _mm(x_ref[...], w_ref[...]) + b_ref[...]
    if act == "gelu":
        # TODO(synk): PyTorch F.gelu defaults to the exact erf form; the tanh
        # approximation is used in-kernel (reference uses the same).
        y = jax.nn.gelu(y, approximate=True)
    o_ref[...] = y


def linear_call(x, w_t, b, *, act=None, row_tile=256):
    n, in_dim = x.shape
    out_dim = w_t.shape[1]
    rt = max(8, min(row_tile, _round_up(n, 8)))
    n_p = _round_up(n, rt)
    x_p = jnp.zeros((n_p, in_dim), jnp.float32).at[:n].set(x)
    out = pl.pallas_call(
        functools.partial(linear_kernel, act=act),
        out_shape=jax.ShapeDtypeStruct((n_p, out_dim), jnp.float32),
        grid=(n_p // rt,),
        in_specs=[pl.BlockSpec((rt, in_dim), lambda i: (i, 0)),
                  pl.BlockSpec((in_dim, out_dim), lambda i: (0, 0)),
                  pl.BlockSpec((1, out_dim), lambda i: (0, 0))],
        out_specs=pl.BlockSpec((rt, out_dim), lambda i: (i, 0)),
        compiler_params=pltpu.CompilerParams(dimension_semantics=("parallel",)),
    )(x_p, w_t, b)
    return out[:n]


# ---------------------------------------------------------------------------
# Pure-JAX references (mirror the PyTorch/DGL forward) for verification
# ---------------------------------------------------------------------------
def hgt_layer_reference(params, node_dict, edge_dict, masks, h, *, n_heads, d_k,
                        use_norm=True, ln_eps=1e-5):
    sqrt_dk = math.sqrt(d_k)
    per_dst = {nt: [] for nt in node_dict}
    for (src, et, dst), e_id in edge_dict.items():
        s_id, d_id = node_dict[src], node_dict[dst]
        k = (h[src] @ params["wk"][s_id].T + params["bk"][s_id]).reshape(-1, n_heads, d_k)
        v = (h[src] @ params["wv"][s_id].T + params["bv"][s_id]).reshape(-1, n_heads, d_k)
        q = (h[dst] @ params["wq"][d_id].T + params["bq"][d_id]).reshape(-1, n_heads, d_k)
        k = jnp.einsum("bij,ijk->bik", k, params["relation_att"][e_id])
        v = jnp.einsum("bij,ijk->bik", v, params["relation_msg"][e_id])
        logits = jnp.einsum("dhc,shc->dsh", q, k) * params["relation_pri"][e_id] / sqrt_dk
        m_ = masks[(src, et, dst)] > 0
        logits = jnp.where(m_[:, :, None], logits, -1e30)
        mx = jnp.max(logits, axis=1, keepdims=True)
        e = jnp.where(m_[:, :, None], jnp.exp(logits - mx), 0.0)
        denom = jnp.sum(e, axis=1, keepdims=True)
        attn = e / jnp.maximum(denom, 1e-30)
        t = jnp.einsum("dsh,shc->dhc", attn, v).reshape(-1, n_heads * d_k)
        per_dst[dst].append(t)
    new_h = {}
    for nt, n_id in node_dict.items():
        t = jnp.mean(jnp.stack(per_dst[nt], 0), axis=0)
        alpha = jax.nn.sigmoid(params["skip"][n_id])
        trans = t @ params["wa"][n_id].T + params["ba"][n_id]
        out = trans * alpha + h[nt] * (1.0 - alpha)
        if use_norm:
            mu = jnp.mean(out, axis=1, keepdims=True)
            var = jnp.mean((out - mu) ** 2, axis=1, keepdims=True)
            out = (out - mu) / jnp.sqrt(var + ln_eps) * params["ln_g"][n_id] + params["ln_b"][n_id]
        new_h[nt] = out
    return new_h


# ---------------------------------------------------------------------------
# Classifier-level forward (adapt + gelu -> HGT layers -> pool -> classify)
# ---------------------------------------------------------------------------
def classifier_forward(params, node_dict, edge_dict, masks, feats,
                       node_ids_dict, graph_node_lists, total_nodes,
                       *, n_heads, d_k, use_norm=True):
    hidden = n_heads * d_k
    h = {nt: linear_call(feats[nt], params["adapt_w"][n_id].T,
                         params["adapt_b"][n_id][None, :], act="gelu")
         for nt, n_id in node_dict.items()}
    for lp in params["layers"]:
        h = hgt_layer_forward(lp, node_dict, edge_dict, masks, h,
                              n_heads=n_heads, d_k=d_k, use_norm=use_norm)
    hiddens = jnp.zeros((total_nodes, hidden), jnp.float32)
    for nt in node_dict:
        hiddens = hiddens.at[node_ids_dict[nt]].set(h[nt])
    emb = jnp.stack([jnp.mean(hiddens[ids], axis=0) for ids in graph_node_lists])
    logits = linear_call(emb, params["cls_w"].T, params["cls_b"][None, :], act=None)
    return logits, emb, h


def classifier_reference(params, node_dict, edge_dict, masks, feats,
                         node_ids_dict, graph_node_lists, total_nodes,
                         *, n_heads, d_k, use_norm=True):
    hidden = n_heads * d_k
    h = {nt: jax.nn.gelu(feats[nt] @ params["adapt_w"][n_id].T + params["adapt_b"][n_id],
                         approximate=True)
         for nt, n_id in node_dict.items()}
    for lp in params["layers"]:
        h = hgt_layer_reference(lp, node_dict, edge_dict, masks, h,
                                n_heads=n_heads, d_k=d_k, use_norm=use_norm)
    hiddens = jnp.zeros((total_nodes, hidden), jnp.float32)
    for nt in node_dict:
        hiddens = hiddens.at[node_ids_dict[nt]].set(h[nt])
    emb = jnp.stack([jnp.mean(hiddens[ids], axis=0) for ids in graph_node_lists])
    logits = emb @ params["cls_w"].T + params["cls_b"]
    return logits, emb, h


# ---------------------------------------------------------------------------
if __name__ == "__main__":
    hidden = 32
    n_heads = 4
    d_k = hidden // n_heads
    num_layers = 2
    use_norm = True

    node_dict = {"a": 0, "b": 1}
    n_nodes = {"a": 24, "b": 160}         # exercises dst padding + multi dst tiles
    canonical_etypes = [("a", "ab", "b"), ("b", "ba", "a"), ("a", "aa", "a")]
    edge_dict = {ce: i for i, ce in enumerate(canonical_etypes)}
    num_types = len(node_dict)
    num_relations = len(edge_dict)
    in_size = num_types                   # node_feature='nodetype' -> one-hot

    key = jax.random.PRNGKey(0)
    kit = iter(jax.random.split(key, 256))

    def lin_w(k, o, i):
        return jax.random.normal(k, (o, i), jnp.float32) / math.sqrt(i)

    def lin_b(k, o):
        return jax.random.normal(k, (o,), jnp.float32) * 0.01

    xav = math.sqrt(6.0 / (2 * d_k))

    def make_layer():
        return {
            "wk": [lin_w(next(kit), hidden, hidden) for _ in range(num_types)],
            "bk": [lin_b(next(kit), hidden) for _ in range(num_types)],
            "wq": [lin_w(next(kit), hidden, hidden) for _ in range(num_types)],
            "bq": [lin_b(next(kit), hidden) for _ in range(num_types)],
            "wv": [lin_w(next(kit), hidden, hidden) for _ in range(num_types)],
            "bv": [lin_b(next(kit), hidden) for _ in range(num_types)],
            "wa": [lin_w(next(kit), hidden, hidden) for _ in range(num_types)],
            "ba": [lin_b(next(kit), hidden) for _ in range(num_types)],
            "relation_pri": jax.random.uniform(next(kit), (num_relations, n_heads),
                                               jnp.float32, 0.5, 1.5),
            "relation_att": jax.random.uniform(next(kit), (num_relations, n_heads, d_k, d_k),
                                               jnp.float32, -xav, xav),
            "relation_msg": jax.random.uniform(next(kit), (num_relations, n_heads, d_k, d_k),
                                               jnp.float32, -xav, xav),
            "skip": 1.0 + 0.2 * jax.random.normal(next(kit), (num_types,), jnp.float32),
            "ln_g": [1.0 + 0.1 * jax.random.normal(next(kit), (hidden,), jnp.float32)
                     for _ in range(num_types)],
            "ln_b": [0.05 * jax.random.normal(next(kit), (hidden,), jnp.float32)
                     for _ in range(num_types)],
        }

    params = {
        "adapt_w": [lin_w(next(kit), hidden, in_size) for _ in range(num_types)],
        "adapt_b": [lin_b(next(kit), hidden) for _ in range(num_types)],
        "layers": [make_layer() for _ in range(num_layers)],
        "cls_w": lin_w(next(kit), 2, hidden),
        "cls_b": lin_b(next(kit), 2),
    }

    # one-hot node-type features (node_feature='nodetype')
    feats = {nt: jnp.tile(jax.nn.one_hot(n_id, num_types, dtype=jnp.float32),
                          (n_nodes[nt], 1))
             for nt, n_id in node_dict.items()}

    # dense 0/1 adjacency per canonical edge type
    masks = {}
    for (src, et, dst) in canonical_etypes:
        masks[(src, et, dst)] = jax.random.bernoulli(
            next(kit), 0.3, (n_nodes[dst], n_nodes[src])).astype(jnp.float32)

    total_nodes = sum(n_nodes.values())
    node_ids_dict = {"a": jnp.arange(0, n_nodes["a"]),
                     "b": jnp.arange(n_nodes["a"], total_nodes)}
    graph_node_lists = [
        jnp.concatenate([jnp.arange(0, 12), jnp.arange(24, 100)]),
        jnp.concatenate([jnp.arange(12, 24), jnp.arange(100, total_nodes)]),
    ]

    # --- 1) standalone fused HGT layer vs pure-JAX (f32) reference ----------
    # bf16 MXU operands -> loosened (flash-attention-style) tolerances.
    h0 = {nt: jax.nn.gelu(feats[nt] @ params["adapt_w"][n_id].T + params["adapt_b"][n_id],
                          approximate=True)
          for nt, n_id in node_dict.items()}
    lay = params["layers"][0]
    out_k = hgt_layer_forward(lay, node_dict, edge_dict, masks, h0,
                              n_heads=n_heads, d_k=d_k, use_norm=use_norm)
    out_k = jax.block_until_ready(out_k)
    out_r = hgt_layer_reference(lay, node_dict, edge_dict, masks, h0,
                                n_heads=n_heads, d_k=d_k, use_norm=use_norm)
    for nt in node_dict:
        assert out_k[nt].shape == (n_nodes[nt], hidden)
        assert jnp.allclose(out_k[nt], out_r[nt], rtol=3e-2, atol=3e-2), \
            f"HGT layer mismatch for node type {nt}"

    # --- 2) full classifier forward ------------------------------------------
    logits_k, emb_k, _ = classifier_forward(
        params, node_dict, edge_dict, masks, feats, node_ids_dict,
        graph_node_lists, total_nodes, n_heads=n_heads, d_k=d_k, use_norm=use_norm)
    logits_k = jax.block_until_ready(logits_k)
    emb_k = jax.block_until_ready(emb_k)
    logits_r, emb_r, _ = classifier_reference(
        params, node_dict, edge_dict, masks, feats, node_ids_dict,
        graph_node_lists, total_nodes, n_heads=n_heads, d_k=d_k, use_norm=use_norm)
    assert logits_k.shape == (len(graph_node_lists), 2)
    assert jnp.allclose(emb_k, emb_r, rtol=5e-2, atol=5e-2), "graph embedding mismatch"
    assert jnp.allclose(logits_k, logits_r, rtol=5e-2, atol=5e-2), "classifier logits mismatch"

    print("KERNEL_OK")
</pallas_src>

<mosaic_0001>
module attributes {stable_mosaic.version = 11 : i64} {
  func.func @hgt_fused_kernel(%arg0: i32, %arg1: i32, %arg2: i32, %arg3: memref<4xi32, #tpu.memory_space<smem>>, %arg4: memref<1x1xf32, #tpu.memory_space<vmem>>, %arg5: memref<16x32xf32, #tpu.memory_space<vmem>>, %arg6: memref<1x256x32xbf16, #tpu.memory_space<vmem>>, %arg7: memref<1x256x32xbf16, #tpu.memory_space<vmem>>, %arg8: memref<1x16x256xbf16, #tpu.memory_space<vmem>>, %arg9: memref<4x1x32xf32, #tpu.memory_space<vmem>>, %arg10: memref<32x32xf32, #tpu.memory_space<vmem>>, %arg11: memref<1x32xf32, #tpu.memory_space<vmem>>, %arg12: memref<32x32xf32, #tpu.memory_space<vmem>>, %arg13: memref<1x32xf32, #tpu.memory_space<vmem>>, %arg14: memref<1x32xf32, #tpu.memory_space<vmem>>, %arg15: memref<1x32xf32, #tpu.memory_space<vmem>>, %arg16: memref<16x32xf32, #tpu.memory_space<vmem>>, %arg17: memref<64x32xbf16, #tpu.memory_space<vmem>>, %arg18: memref<16x32xf32, #tpu.memory_space<vmem>>, %arg19: memref<16x32xf32, #tpu.memory_space<vmem>>, %arg20: memref<64x1xf32, #tpu.memory_space<vmem>>, %arg21: memref<64x1xf32, #tpu.memory_space<vmem>>) attributes {dimension_semantics = [#tpu.dimension_semantics<parallel>, #tpu.dimension_semantics<arbitrary>, #tpu.dimension_semantics<arbitrary>], iteration_bounds = array<i64: 2, 2, 1>, scalar_prefetch = 1 : i64, scratch_operands = 5 : i64, tpu.core_type = #tpu.core_type<tc>, window_params = [{pipeline_mode = #tpu.pipeline_mode<synchronous>, transform_indices = @transform_0, window_bounds = array<i64: 1, 1>}, {transform_indices = @transform_1, window_bounds = array<i64: 16, 32>}, {transform_indices = @transform_2, window_bounds = array<i64: 1, 256, 32>}, {transform_indices = @transform_3, window_bounds = array<i64: 1, 256, 32>}, {transform_indices = @transform_4, window_bounds = array<i64: 1, 16, 256>}, {pipeline_mode = #tpu.pipeline_mode<synchronous>, transform_indices = @transform_5, window_bounds = array<i64: 4, 1, 32>}, {pipeline_mode = #tpu.pipeline_mode<synchronous>, transform_indices = @transform_6, window_bounds = array<i64: 32, 32>}, {pipeline_mode = #tpu.pipeline_mode<synchronous>, transform_indices = @transform_7, window_bounds = array<i64: 1, 32>}, {pipeline_mode = #tpu.pipeline_mode<synchronous>, transform_indices = @transform_8, window_bounds = array<i64: 32, 32>}, {pipeline_mode = #tpu.pipeline_mode<synchronous>, transform_indices = @transform_9, window_bounds = array<i64: 1, 32>}, {pipeline_mode = #tpu.pipeline_mode<synchronous>, transform_indices = @transform_10, window_bounds = array<i64: 1, 32>}, {pipeline_mode = #tpu.pipeline_mode<synchronous>, transform_indices = @transform_11, window_bounds = array<i64: 1, 32>}, {transform_indices = @transform_12, window_bounds = array<i64: 16, 32>}]} {
    %c0_i32 = arith.constant 0 : i32
    %0 = arith.cmpi eq, %arg1, %c0_i32 : i32
    %c0_i32_0 = arith.constant 0 : i32
    %1 = arith.cmpi eq, %arg2, %c0_i32_0 : i32
    %2 = arith.andi %0, %1 : i1
    %3 = arith.extui %2 : i1 to i32
    %c0_i32_1 = arith.constant 0 : i32
    %4 = arith.cmpi ne, %3, %c0_i32_1 : i32
    scf.if %4 {
      %c0 = arith.constant 0 : index
      %c0_11 = arith.constant 0 : index
      %25 = vector.load %arg5[%c0, %c0_11] : memref<16x32xf32, #tpu.memory_space<vmem>>, vector<16x32xf32>
      %c0_12 = arith.constant 0 : index
      %c0_13 = arith.constant 0 : index
      %26 = vector.load %arg10[%c0_12, %c0_13] : memref<32x32xf32, #tpu.memory_space<vmem>>, vector<32x32xf32>
      %cst = arith.constant dense<0.000000e+00> : vector<16x32xf32>
      %27 = tpu.matmul %25, %26, %cst {dimension_numbers = #tpu.dot_dimension_numbers<[1], [0], [0], [1], [0, 0, 1, 1], [], []>} : vector<16x32xf32>, vector<32x32xf32>, vector<16x32xf32> -> vector<16x32xf32>
      %c0_14 = arith.constant 0 : index
      %c0_15 = arith.constant 0 : index
      %28 = vector.load %arg11[%c0_14, %c0_15] : memref<1x32xf32, #tpu.memory_space<vmem>>, vector<1x32xf32>
      %29 = vector.broadcast %28 : vector<1x32xf32> to vector<16x32xf32>
      %30 = arith.addf %27, %29 : vector<16x32xf32>
      %c0_16 = arith.constant 0 : index
      %c0_17 = arith.constant 0 : index
      %c0_18 = arith.constant 0 : index
      %31 = vector.load %arg9[%c0_16, %c0_17, %c0_18] : memref<4x1x32xf32, #tpu.memory_space<vmem>>, vector<1x1x32xf32>
      %32 = vector.shape_cast %31 : vector<1x1x32xf32> to vector<1x32xf32>
      %33 = vector.broadcast %32 : vector<1x32xf32> to vector<16x32xf32>
      %34 = arith.mulf %30, %33 : vector<16x32xf32>
      %35 = arith.truncf %34 : vector<16x32xf32> to vector<16x32xbf16>
      %c0_19 = arith.constant 0 : index
      %c0_20 = arith.constant 0 : index
      %36 = vector.load %arg17[%c0_19, %c0_20] : memref<64x32xbf16, #tpu.memory_space<vmem>>, vector<16x32xbf16>
      tpu.vector_store %arg17[%c0_19, %c0_20], %35 {strides = array<i32>} : memref<64x32xbf16, #tpu.memory_space<vmem>>, vector<16x32xbf16>,
      %c1 = arith.constant 1 : index
      %c0_21 = arith.constant 0 : index
      %c0_22 = arith.constant 0 : index
      %37 = vector.load %arg9[%c1, %c0_21, %c0_22] : memref<4x1x32xf32, #tpu.memory_space<vmem>>, vector<1x1x32xf32>
      %38 = vector.shape_cast %37 : vector<1x1x32xf32> to vector<1x32xf32>
      %39 = vector.broadcast %38 : vector<1x32xf32> to vector<16x32xf32>
      %40 = arith.mulf %30, %39 : vector<16x32xf32>
      %41 = arith.truncf %40 : vector<16x32xf32> to vector<16x32xbf16>
      %c16 = arith.constant 16 : index
      %c0_23 = arith.constant 0 : index
      %42 = vector.load %arg17[%c16, %c0_23] : memref<64x32xbf16, #tpu.memory_space<vmem>>, vector<16x32xbf16>
      tpu.vector_store %arg17[%c16, %c0_23], %41 {strides = array<i32>} : memref<64x32xbf16, #tpu.memory_space<vmem>>, vector<16x32xbf16>,
      %c2 = arith.constant 2 : index
      %c0_24 = arith.constant 0 : index
      %c0_25 = arith.constant 0 : index
      %43 = vector.load %arg9[%c2, %c0_24, %c0_25] : memref<4x1x32xf32, #tpu.memory_space<vmem>>, vector<1x1x32xf32>
      %44 = vector.shape_cast %43 : vector<1x1x32xf32> to vector<1x32xf32>
      %45 = vector.broadcast %44 : vector<1x32xf32> to vector<16x32xf32>
      %46 = arith.mulf %30, %45 : vector<16x32xf32>
      %47 = arith.truncf %46 : vector<16x32xf32> to vector<16x32xbf16>
      %c32 = arith.constant 32 : index
      %c0_26 = arith.constant 0 : index
      %48 = vector.load %arg17[%c32, %c0_26] : memref<64x32xbf16, #tpu.memory_space<vmem>>, vector<16x32xbf16>
      tpu.vector_store %arg17[%c32, %c0_26], %47 {strides = array<i32>} : memref<64x32xbf16, #tpu.memory_space<vmem>>, vector<16x32xbf16>,
      %c3 = arith.constant 3 : index
      %c0_27 = arith.constant 0 : index
      %c0_28 = arith.constant 0 : index
      %49 = vector.load %arg9[%c3, %c0_27, %c0_28] : memref<4x1x32xf32, #tpu.memory_space<vmem>>, vector<1x1x32xf32>
      %50 = vector.shape_cast %49 : vector<1x1x32xf32> to vector<1x32xf32>
      %51 = vector.broadcast %50 : vector<1x32xf32> to vector<16x32xf32>
      %52 = arith.mulf %30, %51 : vector<16x32xf32>
      %53 = arith.truncf %52 : vector<16x32xf32> to vector<16x32xbf16>
      %c48 = arith.constant 48 : index
      %c0_29 = arith.constant 0 : index
      %54 = vector.load %arg17[%c48, %c0_29] : memref<64x32xbf16, #tpu.memory_space<vmem>>, vector<16x32xbf16>
      tpu.vector_store %arg17[%c48, %c0_29], %53 {strides = array<i32>} : memref<64x32xbf16, #tpu.memory_space<vmem>>, vector<16x32xbf16>,
      %cst_30 = arith.constant 0.000000e+00 : f32
      %55 = vector.broadcast %cst_30 : f32 to vector<16x32xf32>
      %c0_31 = arith.constant 0 : index
      %c0_32 = arith.constant 0 : index
      %56 = vector.load %arg18[%c0_31, %c0_32] : memref<16x32xf32, #tpu.memory_space<vmem>>, vector<16x32xf32>
      tpu.vector_store %arg18[%c0_31, %c0_32], %55 {strides = array<i32>} : memref<16x32xf32, #tpu.memory_space<vmem>>, vector<16x32xf32>,
    } else {
    }
    %c0_i32_2 = arith.constant 0 : i32
    %5 = arith.cmpi eq, %arg2, %c0_i32_2 : i32
    %6 = arith.extui %5 : i1 to i32
    %c0_i32_3 = arith.constant 0 : i32
    %7 = arith.cmpi ne, %6, %c0_i32_3 : i32
    scf.if %7 {
      %cst = arith.constant -1.000000e+30 : f32
      %25 = vector.broadcast %cst : f32 to vector<64x1xf32>
      %c0 = arith.constant 0 : index
      %c0_11 = arith.constant 0 : index
      %26 = vector.load %arg20[%c0, %c0_11] : memref<64x1xf32, #tpu.memory_space<vmem>>, vector<64x1xf32>
      tpu.vector_store %arg20[%c0, %c0_11], %25 {strides = array<i32>} : memref<64x1xf32, #tpu.memory_space<vmem>>, vector<64x1xf32>,
      %cst_12 = arith.constant 0.000000e+00 : f32
      %27 = vector.broadcast %cst_12 : f32 to vector<64x1xf32>
      %c0_13 = arith.constant 0 : index
      %c0_14 = arith.constant 0 : index
      %28 = vector.load %arg21[%c0_13, %c0_14] : memref<64x1xf32, #tpu.memory_space<vmem>>, vector<64x1xf32>
      tpu.vector_store %arg21[%c0_13, %c0_14], %27 {strides = array<i32>} : memref<64x1xf32, #tpu.memory_space<vmem>>, vector<64x1xf32>,
      %cst_15 = arith.constant 0.000000e+00 : f32
      %29 = vector.broadcast %cst_15 : f32 to vector<16x32xf32>
      %c0_16 = arith.constant 0 : index
      %c0_17 = arith.constant 0 : index
      %30 = vector.load %arg19[%c0_16, %c0_17] : memref<16x32xf32, #tpu.memory_space<vmem>>, vector<16x32xf32>
      tpu.vector_store %arg19[%c0_16, %c0_17], %29 {strides = array<i32>} : memref<16x32xf32, #tpu.memory_space<vmem>>, vector<16x32xf32>,
    } else {
    }
    %c2_i32 = arith.constant 2 : i32
    %8 = arith.muli %arg1, %c2_i32 : i32
    %9 = arith.addi %8, %arg0 : i32
    %c1_i32 = arith.constant 1 : i32
    %10 = arith.muli %9, %c1_i32 : i32
    %11 = arith.addi %10, %arg2 : i32
    %12 = arith.index_cast %11 : i32 to index
    %13 = memref.load %arg3[%12] : memref<4xi32, #tpu.memory_space<smem>>
    %c0_i32_4 = arith.constant 0 : i32
    %14 = arith.cmpi sgt, %13, %c0_i32_4 : i32
    %15 = arith.extui %14 : i1 to i32
    %c0_i32_5 = arith.constant 0 : i32
    %16 = arith.cmpi ne, %15, %c0_i32_5 : i32
    scf.if %16 {
      %c0 = arith.constant 0 : index
      %c0_11 = arith.constant 0 : index
      %c0_12 = arith.constant 0 : index
      %25 = vector.load %arg6[%c0, %c0_11, %c0_12] : memref<1x256x32xbf16, #tpu.memory_space<vmem>>, vector<1x256x32xbf16>
      %26 = vector.shape_cast %25 : vector<1x256x32xbf16> to vector<256x32xbf16>
      %c0_13 = arith.constant 0 : index
      %c0_14 = arith.constant 0 : index
      %c0_15 = arith.constant 0 : index
      %27 = vector.load %arg7[%c0_13, %c0_14, %c0_15] : memref<1x256x32xbf16, #tpu.memory_space<vmem>>, vector<1x256x32xbf16>
      %28 = vector.shape_cast %27 : vector<1x256x32xbf16> to vector<256x32xbf16>
      %c0_16 = arith.constant 0 : index
      %c0_17 = arith.constant 0 : index
      %c0_18 = arith.constant 0 : index
      %29 = vector.load %arg8[%c0_16, %c0_17, %c0_18] : memref<1x16x256xbf16, #tpu.memory_space<vmem>>, vector<1x16x256xbf16>
      %30 = vector.shape_cast %29 : vector<1x16x256xbf16> to vector<16x256xbf16>
      %31 = arith.extf %30 : vector<16x256xbf16> to vector<16x256xf32>
      %c0_19 = arith.constant 0 : index
      %c0_20 = arith.constant 0 : index
      %32 = vector.load %arg17[%c0_19, %c0_20] : memref<64x32xbf16, #tpu.memory_space<vmem>>, vector<64x32xbf16>
      %cst = arith.constant dense<0.000000e+00> : vector<64x256xf32>
      %33 = tpu.matmul %32, %26, %cst {dimension_numbers = #tpu.dot_dimension_numbers<[1], [1], [0], [0], [0, 0, 1, 0], [], []>} : vector<64x32xbf16>, vector<256x32xbf16>, vector<64x256xf32> -> vector<64x256xf32>
      %c0_21 = arith.constant 0 : index
      %c0_22 = arith.constant 0 : index
      %34 = vector.load %arg20[%c0_21, %c0_22] : memref<64x1xf32, #tpu.memory_space<vmem>>, vector<64x1xf32>
      %cst_23 = arith.constant dense<0xFF800000> : vector<64xf32>
      %35 = vector.multi_reduction <maximumf>, %33, %cst_23 [1] : vector<64x256xf32> to vector<64xf32>
      %36 = vector.shape_cast %35 : vector<64xf32> to vector<64x1xf32>
      %37 = arith.maximumf %34, %36 : vector<64x1xf32>
      %38 = arith.subf %34, %37 : vector<64x1xf32>
      %39 = math.exp %38 : vector<64x1xf32>
      %40 = tpu.concatenate %31, %31, %31, %31 in 0 : vector<16x256xf32>, vector<16x256xf32>, vector<16x256xf32>, vector<16x256xf32> -> vector<64x256xf32>
      %41 = vector.broadcast %37 : vector<64x1xf32> to vector<64x256xf32>
      %42 = arith.subf %33, %41 : vector<64x256xf32>
      %43 = math.exp %42 : vector<64x256xf32>
      %44 = arith.mulf %43, %40 : vector<64x256xf32>
      %c0_24 = arith.constant 0 : index
      %c0_25 = arith.constant 0 : index
      %45 = vector.load %arg21[%c0_24, %c0_25] : memref<64x1xf32, #tpu.memory_space<vmem>>, vector<64x1xf32>
      %46 = arith.mulf %39, %45 : vector<64x1xf32>
      %cst_26 = arith.constant dense<0.000000e+00> : vector<64xf32>
      %47 = vector.multi_reduction <add>, %44, %cst_26 [1] : vector<64x256xf32> to vector<64xf32>
      %48 = vector.shape_cast %47 : vector<64xf32> to vector<64x1xf32>
      %49 = arith.addf %46, %48 : vector<64x1xf32>
      %c0_27 = arith.constant 0 : index
      %c0_28 = arith.constant 0 : index
      %50 = vector.load %arg21[%c0_27, %c0_28] : memref<64x1xf32, #tpu.memory_space<vmem>>, vector<64x1xf32>
      tpu.vector_store %arg21[%c0_27, %c0_28], %49 {strides = array<i32>} : memref<64x1xf32, #tpu.memory_space<vmem>>, vector<64x1xf32>,
      %c0_29 = arith.constant 0 : index
      %c0_30 = arith.constant 0 : index
      %51 = vector.load %arg20[%c0_29, %c0_30] : memref<64x1xf32, #tpu.memory_space<vmem>>, vector<64x1xf32>
      tpu.vector_store %arg20[%c0_29, %c0_30], %37 {strides = array<i32>} : memref<64x1xf32, #tpu.memory_space<vmem>>, vector<64x1xf32>,
      %52 = arith.truncf %44 : vector<64x256xf32> to vector<64x256xbf16>
      %cst_31 = arith.constant dense<0.000000e+00> : vector<64x32xf32>
      %53 = tpu.matmul %52, %28, %cst_31 {dimension_numbers = #tpu.dot_dimension_numbers<[1], [0], [0], [1], [0, 0, 1, 1], [], []>} : vector<64x256xbf16>, vector<256x32xbf16>, vector<64x32xf32> -> vector<64x32xf32>
      %54 = vector.extract_strided_slice %39 {offsets = [0, 0], sizes = [16, 1], strides = [1, 1]} : vector<64x1xf32> to vector<16x1xf32>
      %c0_32 = arith.constant 0 : index
      %c0_33 = arith.constant 0 : index
      %c0_34 = arith.constant 0 : index
      %55 = vector.load %arg9[%c0_32, %c0_33, %c0_34] : memref<4x1x32xf32, #tpu.memory_space<vmem>>, vector<1x1x32xf32>
      %56 = vector.shape_cast %55 : vector<1x1x32xf32> to vector<1x32xf32>
      %57 = vector.broadcast %54 : vector<16x1xf32> to vector<16x32xf32>
      %58 = vector.broadcast %56 : vector<1x32xf32> to vector<16x32xf32>
      %59 = arith.mulf %57, %58 : vector<16x32xf32>
      %60 = vector.extract_strided_slice %53 {offsets = [0, 0], sizes = [16, 32], strides = [1, 1]} : vector<64x32xf32> to vector<16x32xf32>
      %c0_35 = arith.constant 0 : index
      %c0_36 = arith.constant 0 : index
      %c0_37 = arith.constant 0 : index
      %61 = vector.load %arg9[%c0_35, %c0_36, %c0_37] : memref<4x1x32xf32, #tpu.memory_space<vmem>>, vector<1x1x32xf32>
      %62 = vector.shape_cast %61 : vector<1x1x32xf32> to vector<1x32xf32>
      %63 = vector.broadcast %62 : vector<1x32xf32> to vector<16x32xf32>
      %64 = arith.mulf %60, %63 : vector<16x32xf32>
      %65 = vector.extract_strided_slice %39 {offsets = [16, 0], sizes = [16, 1], strides = [1, 1]} : vector<64x1xf32> to vector<16x1xf32>
      %c1 = arith.constant 1 : index
      %c0_38 = arith.constant 0 : index
      %c0_39 = arith.constant 0 : index
      %66 = vector.load %arg9[%c1, %c0_38, %c0_39] : memref<4x1x32xf32, #tpu.memory_space<vmem>>, vector<1x1x32xf32>
      %67 = vector.shape_cast %66 : vector<1x1x32xf32> to vector<1x32xf32>
      %68 = vector.broadcast %65 : vector<16x1xf32> to vector<16x32xf32>
      %69 = vector.broadcast %67 : vector<1x32xf32> to vector<16x32xf32>
      %70 = arith.mulf %68, %69 : vector<16x32xf32>
      %71 = vector.extract_strided_slice %53 {offsets = [16, 0], sizes = [16, 32], strides = [1, 1]} : vector<64x32xf32> to vector<16x32xf32>
      %c1_40 = arith.constant 1 : index
      %c0_41 = arith.constant 0 : index
      %c0_42 = arith.constant 0 : index
      %72 = vector.load %arg9[%c1_40, %c0_41, %c0_42] : memref<4x1x32xf32, #tpu.memory_space<vmem>>, vector<1x1x32xf32>
      %73 = vector.shape_cast %72 : vector<1x1x32xf32> to vector<1x32xf32>
      %74 = vector.broadcast %73 : vector<1x32xf32> to vector<16x32xf32>
      %75 = arith.mulf %71, %74 : vector<16x32xf32>
      %76 = arith.addf %59, %70 : vector<16x32xf32>
      %77 = arith.addf %64, %75 : vector<16x32xf32>
      %78 = vector.extract_strided_slice %39 {offsets = [32, 0], sizes = [16, 1], strides = [1, 1]} : vector<64x1xf32> to vector<16x1xf32>
      %c2 = arith.constant 2 : index
      %c0_43 = arith.constant 0 : index
      %c0_44 = arith.constant 0 : index
      %79 = vector.load %arg9[%c2, %c0_43, %c0_44] : memref<4x1x32xf32, #tpu.memory_space<vmem>>, vector<1x1x32xf32>
      %80 = vector.shape_cast %79 : vector<1x1x32xf32> to vector<1x32xf32>
      %81 = vector.broadcast %78 : vector<16x1xf32> to vector<16x32xf32>
      %82 = vector.broadcast %80 : vector<1x32xf32> to vector<16x32xf32>
      %83 = arith.mulf %81, %82 : vector<16x32xf32>
      %84 = vector.extract_strided_slice %53 {offsets = [32, 0], sizes = [16, 32], strides = [1, 1]} : vector<64x32xf32> to vector<16x32xf32>
      %c2_45 = arith.constant 2 : index
      %c0_46 = arith.constant 0 : index
      %c0_47 = arith.constant 0 : index
      %85 = vector.load %arg9[%c2_45, %c0_46, %c0_47] : memref<4x1x32xf32, #tpu.memory_space<vmem>>, vector<1x1x32xf32>
      %86 = vector.shape_cast %85 : vector<1x1x32xf32> to vector<1x32xf32>
      %87 = vector.broadcast %86 : vector<1x32xf32> to vector<16x32xf32>
      %88 = arith.mulf %84, %87 : vector<16x32xf32>
      %89 = arith.addf %76, %83 : vector<16x32xf32>
      %90 = arith.addf %77, %88 : vector<16x32xf32>
      %91 = vector.extract_strided_slice %39 {offsets = [48, 0], sizes = [16, 1], strides = [1, 1]} : vector<64x1xf32> to vector<16x1xf32>
      %c3 = arith.constant 3 : index
      %c0_48 = arith.constant 0 : index
      %c0_49 = arith.constant 0 : index
      %92 = vector.load %arg9[%c3, %c0_48, %c0_49] : memref<4x1x32xf32, #tpu.memory_space<vmem>>, vector<1x1x32xf32>
      %93 = vector.shape_cast %92 : vector<1x1x32xf32> to vector<1x32xf32>
      %94 = vector.broadcast %91 : vector<16x1xf32> to vector<16x32xf32>
      %95 = vector.broadcast %93 : vector<1x32xf32> to vector<16x32xf32>
      %96 = arith.mulf %94, %95 : vector<16x32xf32>
      %97 = vector.extract_strided_slice %53 {offsets = [48, 0], sizes = [16, 32], strides = [1, 1]} : vector<64x32xf32> to vector<16x32xf32>
      %c3_50 = arith.constant 3 : index
      %c0_51 = arith.constant 0 : index
      %c0_52 = arith.constant 0 : index
      %98 = vector.load %arg9[%c3_50, %c0_51, %c0_52] : memref<4x1x32xf32, #tpu.memory_space<vmem>>, vector<1x1x32xf32>
      %99 = vector.shape_cast %98 : vector<1x1x32xf32> to vector<1x32xf32>
      %100 = vector.broadcast %99 : vector<1x32xf32> to vector<16x32xf32>
      %101 = arith.mulf %97, %100 : vector<16x32xf32>
      %102 = arith.addf %89, %96 : vector<16x32xf32>
      %103 = arith.addf %90, %101 : vector<16x32xf32>
      %c0_53 = arith.constant 0 : index
      %c0_54 = arith.constant 0 : index
      %104 = vector.load %arg19[%c0_53, %c0_54] : memref<16x32xf32, #tpu.memory_space<vmem>>, vector<16x32xf32>
      %105 = arith.mulf %104, %102 : vector<16x32xf32>
      %106 = arith.addf %105, %103 : vector<16x32xf32>
      %c0_55 = arith.constant 0 : index
      %c0_56 = arith.constant 0 : index
      %107 = vector.load %arg19[%c0_55, %c0_56] : memref<16x32xf32, #tpu.memory_space<vmem>>, vector<16x32xf32>
      tpu.vector_store %arg19[%c0_55, %c0_56], %106 {strides = array<i32>} : memref<16x32xf32, #tpu.memory_space<vmem>>, vector<16x32xf32>,
    } else {
    }
    %c0_i32_6 = arith.constant 0 : i32
    %17 = arith.cmpi eq, %arg2, %c0_i32_6 : i32
    %18 = arith.extui %17 : i1 to i32
    %c0_i32_7 = arith.constant 0 : i32
    %19 = arith.cmpi ne, %18, %c0_i32_7 : i32
    scf.if %19 {
      %c0 = arith.constant 0 : index
      %c0_11 = arith.constant 0 : index
      %25 = vector.load %arg21[%c0, %c0_11] : memref<64x1xf32, #tpu.memory_space<vmem>>, vector<64x1xf32>
      %cst = arith.constant 1.000000e-30 : f32
      %26 = vector.broadcast %cst : f32 to vector<64x1xf32>
      %27 = arith.maximumf %25, %26 : vector<64x1xf32>
      %28 = tpu.reciprocal %27 : vector<64x1xf32> -> vector<64x1xf32>
      %29 = vector.extract_strided_slice %28 {offsets = [0, 0], sizes = [16, 1], strides = [1, 1]} : vector<64x1xf32> to vector<16x1xf32>
      %c0_12 = arith.constant 0 : index
      %c0_13 = arith.constant 0 : index
      %c0_14 = arith.constant 0 : index
      %30 = vector.load %arg9[%c0_12, %c0_13, %c0_14] : memref<4x1x32xf32, #tpu.memory_space<vmem>>, vector<1x1x32xf32>
      %31 = vector.shape_cast %30 : vector<1x1x32xf32> to vector<1x32xf32>
      %32 = vector.broadcast %29 : vector<16x1xf32> to vector<16x32xf32>
      %33 = vector.broadcast %31 : vector<1x32xf32> to vector<16x32xf32>
      %34 = arith.mulf %32, %33 : vector<16x32xf32>
      %35 = vector.extract_strided_slice %28 {offsets = [16, 0], sizes = [16, 1], strides = [1, 1]} : vector<64x1xf32> to vector<16x1xf32>
      %c1 = arith.constant 1 : index
      %c0_15 = arith.constant 0 : index
      %c0_16 = arith.constant 0 : index
      %36 = vector.load %arg9[%c1, %c0_15, %c0_16] : memref<4x1x32xf32, #tpu.memory_space<vmem>>, vector<1x1x32xf32>
      %37 = vector.shape_cast %36 : vector<1x1x32xf32> to vector<1x32xf32>
      %38 = vector.broadcast %35 : vector<16x1xf32> to vector<16x32xf32>
      %39 = vector.broadcast %37 : vector<1x32xf32> to vector<16x32xf32>
      %40 = arith.mulf %38, %39 : vector<16x32xf32>
      %41 = arith.addf %34, %40 : vector<16x32xf32>
      %42 = vector.extract_strided_slice %28 {offsets = [32, 0], sizes = [16, 1], strides = [1, 1]} : vector<64x1xf32> to vector<16x1xf32>
      %c2 = arith.constant 2 : index
      %c0_17 = arith.constant 0 : index
      %c0_18 = arith.constant 0 : index
      %43 = vector.load %arg9[%c2, %c0_17, %c0_18] : memref<4x1x32xf32, #tpu.memory_space<vmem>>, vector<1x1x32xf32>
      %44 = vector.shape_cast %43 : vector<1x1x32xf32> to vector<1x32xf32>
      %45 = vector.broadcast %42 : vector<16x1xf32> to vector<16x32xf32>
      %46 = vector.broadcast %44 : vector<1x32xf32> to vector<16x32xf32>
      %47 = arith.mulf %45, %46 : vector<16x32xf32>
      %48 = arith.addf %41, %47 : vector<16x32xf32>
      %49 = vector.extract_strided_slice %28 {offsets = [48, 0], sizes = [16, 1], strides = [1, 1]} : vector<64x1xf32> to vector<16x1xf32>
      %c3 = arith.constant 3 : index
      %c0_19 = arith.constant 0 : index
      %c0_20 = arith.constant 0 : index
      %50 = vector.load %arg9[%c3, %c0_19, %c0_20] : memref<4x1x32xf32, #tpu.memory_space<vmem>>, vector<1x1x32xf32>
      %51 = vector.shape_cast %50 : vector<1x1x32xf32> to vector<1x32xf32>
      %52 = vector.broadcast %49 : vector<16x1xf32> to vector<16x32xf32>
      %53 = vector.broadcast %51 : vector<1x32xf32> to vector<16x32xf32>
      %54 = arith.mulf %52, %53 : vector<16x32xf32>
      %55 = arith.addf %48, %54 : vector<16x32xf32>
      %c0_21 = arith.constant 0 : index
      %c0_22 = arith.constant 0 : index
      %56 = vector.load %arg18[%c0_21, %c0_22] : memref<16x32xf32, #tpu.memory_space<vmem>>, vector<16x32xf32>
      %c0_23 = arith.constant 0 : index
      %c0_24 = arith.constant 0 : index
      %57 = vector.load %arg19[%c0_23, %c0_24] : memref<16x32xf32, #tpu.memory_space<vmem>>, vector<16x32xf32>
      %58 = arith.mulf %57, %55 : vector<16x32xf32>
      %59 = arith.addf %56, %58 : vector<16x32xf32>
      %c0_25 = arith.constant 0 : index
      %c0_26 = arith.constant 0 : index
      %60 = vector.load %arg18[%c0_25, %c0_26] : memref<16x32xf32, #tpu.memory_space<vmem>>, vector<16x32xf32>
      tpu.vector_store %arg18[%c0_25, %c0_26], %59 {strides = array<i32>} : memref<16x32xf32, #tpu.memory_space<vmem>>, vector<16x32xf32>,
    } else {
    }
    %c1_i32_8 = arith.constant 1 : i32
    %20 = arith.cmpi eq, %arg1, %c1_i32_8 : i32
    %c0_i32_9 = arith.constant 0 : i32
    %21 = arith.cmpi eq, %arg2, %c0_i32_9 : i32
    %22 = arith.andi %20, %21 : i1
    %23 = arith.extui %22 : i1 to i32
    %c0_i32_10 = arith.constant 0 : i32
    %24 = arith.cmpi ne, %23, %c0_i32_10 : i32
    scf.if %24 {
      %c0 = arith.constant 0 : index
      %c0_11 = arith.constant 0 : index
      %25 = vector.load %arg4[%c0, %c0_11] : memref<1x1xf32, #tpu.memory_space<vmem>>, vector<1x1xf32>
      %c0_12 = arith.constant 0 : index
      %c0_13 = arith.constant 0 : index
      %26 = vector.load %arg18[%c0_12, %c0_13] : memref<16x32xf32, #tpu.memory_space<vmem>>, vector<16x32xf32>
      %cst = arith.constant 5.000000e-01 : f32
      %27 = vector.broadcast %cst : f32 to vector<16x32xf32>
      %28 = arith.mulf %26, %27 : vector<16x32xf32>
      %c0_14 = arith.constant 0 : index
      %c0_15 = arith.constant 0 : index
      %29 = vector.load %arg12[%c0_14, %c0_15] : memref<32x32xf32, #tpu.memory_space<vmem>>, vector<32x32xf32>
      %cst_16 = arith.constant dense<0.000000e+00> : vector<16x32xf32>
      %30 = tpu.matmul %28, %29, %cst_16 {dimension_numbers = #tpu.dot_dimension_numbers<[1], [0], [0], [1], [0, 0, 1, 1], [], []>} : vector<16x32xf32>, vector<32x32xf32>, vector<16x32xf32> -> vector<16x32xf32>
      %c0_17 = arith.constant 0 : index
      %c0_18 = arith.constant 0 : index
      %31 = vector.load %arg13[%c0_17, %c0_18] : memref<1x32xf32, #tpu.memory_space<vmem>>, vector<1x32xf32>
      %32 = vector.broadcast %31 : vector<1x32xf32> to vector<16x32xf32>
      %33 = arith.addf %30, %32 : vector<16x32xf32>
      %34 = vector.broadcast %25 : vector<1x1xf32> to vector<16x32xf32>
      %35 = arith.mulf %33, %34 : vector<16x32xf32>
      %c0_19 = arith.constant 0 : index
      %c0_20 = arith.constant 0 : index
      %36 = vector.load %arg5[%c0_19, %c0_20] : memref<16x32xf32, #tpu.memory_space<vmem>>, vector<16x32xf32>
      %cst_21 = arith.constant 1.000000e+00 : f32
      %37 = vector.broadcast %cst_21 : f32 to vector<1x1xf32>
      %38 = arith.subf %37, %25 : vector<1x1xf32>
      %39 = vector.broadcast %38 : vector<1x1xf32> to vector<16x32xf32>
      %40 = arith.mulf %36, %39 : vector<16x32xf32>
      %41 = arith.addf %35, %40 : vector<16x32xf32>
      %cst_22 = arith.constant dense<0.000000e+00> : vector<16xf32>
      %42 = vector.multi_reduction <add>, %41, %cst_22 [1] : vector<16x32xf32> to vector<16xf32>
      %43 = vector.shape_cast %42 : vector<16xf32> to vector<16x1xf32>
      %cst_23 = arith.constant 3.200000e+01 : f32
      %44 = vector.broadcast %cst_23 : f32 to vector<16x1xf32>
      %45 = arith.divf %43, %44 : vector<16x1xf32>
      %46 = vector.broadcast %45 : vector<16x1xf32> to vector<16x32xf32>
      %47 = arith.subf %41, %46 : vector<16x32xf32>
      %48 = arith.mulf %47, %47 : vector<16x32xf32>
      %cst_24 = arith.constant dense<0.000000e+00> : vector<16xf32>
      %49 = vector.multi_reduction <add>, %48, %cst_24 [1] : vector<16x32xf32> to vector<16xf32>
      %50 = vector.shape_cast %49 : vector<16xf32> to vector<16x1xf32>
      %cst_25 = arith.constant 3.200000e+01 : f32
      %51 = vector.broadcast %cst_25 : f32 to vector<16x1xf32>
      %52 = arith.divf %50, %51 : vector<16x1xf32>
      %53 = vector.broadcast %45 : vector<16x1xf32> to vector<16x32xf32>
      %54 = arith.subf %41, %53 : vector<16x32xf32>
      %cst_26 = arith.constant 9.99999974E-6 : f32
      %55 = vector.broadcast %cst_26 : f32 to vector<16x1xf32>
      %56 = arith.addf %52, %55 : vector<16x1xf32>
      %57 = math.rsqrt %56 : vector<16x1xf32>
      %58 = vector.broadcast %57 : vector<16x1xf32> to vector<16x32xf32>
      %59 = arith.mulf %54, %58 : vector<16x32xf32>
      %c0_27 = arith.constant 0 : index
      %c0_28 = arith.constant 0 : index
      %60 = vector.load %arg14[%c0_27, %c0_28] : memref<1x32xf32, #tpu.memory_space<vmem>>, vector<1x32xf32>
      %61 = vector.broadcast %60 : vector<1x32xf32> to vector<16x32xf32>
      %62 = arith.mulf %59, %61 : vector<16x32xf32>
      %c0_29 = arith.constant 0 : index
      %c0_30 = arith.constant 0 : index
      %63 = vector.load %arg15[%c0_29, %c0_30] : memref<1x32xf32, #tpu.memory_space<vmem>>, vector<1x32xf32>
      %64 = vector.broadcast %63 : vector<1x32xf32> to vector<16x32xf32>
      %65 = arith.addf %62, %64 : vector<16x32xf32>
      %c0_31 = arith.constant 0 : index
      %c0_32 = arith.constant 0 : index
      %66 = vector.load %arg16[%c0_31, %c0_32] : memref<16x32xf32, #tpu.memory_space<vmem>>, vector<16x32xf32>
      tpu.vector_store %arg16[%c0_31, %c0_32], %65 {strides = array<i32>} : memref<16x32xf32, #tpu.memory_space<vmem>>, vector<16x32xf32>,
    } else {
    }
    return
  }
  func.func @transform_0(%arg0: i32, %arg1: i32, %arg2: i32, %arg3: memref<4xi32, #tpu.memory_space<smem>>) -> (i32, i32) {
    %c0_i32 = arith.constant 0 : i32
    %c0_i32_0 = arith.constant 0 : i32
    %c0_i32_1 = arith.constant 0 : i32
    return %c0_i32, %c0_i32_0 : i32, i32
  }
  func.func @transform_1(%arg0: i32, %arg1: i32, %arg2: i32, %arg3: memref<4xi32, #tpu.memory_space<smem>>) -> (i32, i32) {
    %c0_i32 = arith.constant 0 : i32
    %c0_i32_0 = arith.constant 0 : i32
    return %arg0, %c0_i32 : i32, i32
  }
  func.func @transform_2(%arg0: i32, %arg1: i32, %arg2: i32, %arg3: memref<4xi32, #tpu.memory_space<smem>>) -> (i32, i32, i32) {
    %c0_i32 = arith.constant 0 : i32
    %c0_i32_0 = arith.constant 0 : i32
    return %arg1, %arg2, %c0_i32 : i32, i32, i32
  }
  func.func @transform_3(%arg0: i32, %arg1: i32, %arg2: i32, %arg3: memref<4xi32, #tpu.memory_space<smem>>) -> (i32, i32, i32) {
    %c0_i32 = arith.constant 0 : i32
    %c0_i32_0 = arith.constant 0 : i32
    return %arg1, %arg2, %c0_i32 : i32, i32, i32
  }
  func.func @transform_4(%arg0: i32, %arg1: i32, %arg2: i32, %arg3: memref<4xi32, #tpu.memory_space<smem>>) -> (i32, i32, i32) {
    %c0_i32 = arith.constant 0 : i32
    return %arg1, %arg0, %arg2 : i32, i32, i32
  }
  func.func @transform_5(%arg0: i32, %arg1: i32, %arg2: i32, %arg3: memref<4xi32, #tpu.memory_space<smem>>) -> (i32, i32, i32) {
    %c0_i32 = arith.constant 0 : i32
    %c0_i32_0 = arith.constant 0 : i32
    %c0_i32_1 = arith.constant 0 : i32
    %c0_i32_2 = arith.constant 0 : i32
    return %c0_i32, %c0_i32_0, %c0_i32_1 : i32, i32, i32
  }
  func.func @transform_6(%arg0: i32, %arg1: i32, %arg2: i32, %arg3: memref<4xi32, #tpu.memory_space<smem>>) -> (i32, i32) {
    %c0_i32 = arith.constant 0 : i32
    %c0_i32_0 = arith.constant 0 : i32
    %c0_i32_1 = arith.constant 0 : i32
    return %c0_i32, %c0_i32_0 : i32, i32
  }
  func.func @transform_7(%arg0: i32, %arg1: i32, %arg2: i32, %arg3: memref<4xi32, #tpu.memory_space<smem>>) -> (i32, i32) {
    %c0_i32 = arith.constant 0 : i32
    %c0_i32_0 = arith.constant 0 : i32
    %c0_i32_1 = arith.constant 0 : i32
    return %c0_i32, %c0_i32_0 : i32, i32
  }
  func.func @transform_8(%arg0: i32, %arg1: i32, %arg2: i32, %arg3: memref<4xi32, #tpu.memory_space<smem>>) -> (i32, i32) {
    %c0_i32 = arith.constant 0 : i32
    %c0_i32_0 = arith.constant 0 : i32
    %c0_i32_1 = arith.constant 0 : i32
    return %c0_i32, %c0_i32_0 : i32, i32
  }
  func.func @transform_9(%arg0: i32, %arg1: i32, %arg2: i32, %arg3: memref<4xi32, #tpu.memory_space<smem>>) -> (i32, i32) {
    %c0_i32 = arith.constant 0 : i32
    %c0_i32_0 = arith.constant 0 : i32
    %c0_i32_1 = arith.constant 0 : i32
    return %c0_i32, %c0_i32_0 : i32, i32
  }
  func.func @transform_10(%arg0: i32, %arg1: i32, %arg2: i32, %arg3: memref<4xi32, #tpu.memory_space<smem>>) -> (i32, i32) {
    %c0_i32 = arith.constant 0 : i32
    %c0_i32_0 = arith.constant 0 : i32
    %c0_i32_1 = arith.constant 0 : i32
    return %c0_i32, %c0_i32_0 : i32, i32
  }
  func.func @transform_11(%arg0: i32, %arg1: i32, %arg2: i32, %arg3: memref<4xi32, #tpu.memory_space<smem>>) -> (i32, i32) {
    %c0_i32 = arith.constant 0 : i32
    %c0_i32_0 = arith.constant 0 : i32
    %c0_i32_1 = arith.constant 0 : i32
    return %c0_i32, %c0_i32_0 : i32, i32
  }
  func.func @transform_12(%arg0: i32, %arg1: i32, %arg2: i32, %arg3: memref<4xi32, #tpu.memory_space<smem>>) -> (i32, i32) {
    %c0_i32 = arith.constant 0 : i32
    %c0_i32_0 = arith.constant 0 : i32
    return %arg0, %c0_i32 : i32, i32
  }
}

</mosaic_0001>

<bundles_post_ra>
// kernel: tpu_custom_call.1
= control target key start
LH: loop header
LB: loop body
LE: loop exit
PB: predicated region body
PF: predicated region fallthrough
CT: control target
= control target key end

     0   :  { %s3116_s0 = inlined_call_operand.vmem [shape: s32[4], index: 0, kind: input, shape index: {}]   ;;  %s3117_s2 = inlined_call_operand.vmem [shape: f32[32,32], index: 2, kind: input, shape index: {}]   ;;  %s3118_s3 = inlined_call_operand.vmem [shape: bf16[2,256,32], index: 3, kind: input, shape index: {}]   ;;  %s3119_s4 = inlined_call_operand.vmem [shape: bf16[2,256,32], index: 4, kind: input, shape index: {}]   ;;  %s3120_s5 = inlined_call_operand.vmem [shape: bf16[2,32,256], index: 5, kind: input, shape index: {}]   ;;  %s3121_s6 = inlined_call_operand.vmem [shape: f32[4,1,32], index: 6, kind: input, shape index: {}]   ;;  %s3122_s7 = inlined_call_operand.vmem [shape: f32[32,32], index: 7, kind: input, shape index: {}]   ;;  %s3123_s8 = inlined_call_operand.vmem [shape: f32[1,32], index: 8, kind: input, shape index: {}]   ;;  %s3124_s9 = inlined_call_operand.vmem [shape: f32[32,32], index: 9, kind: input, shape index: {}]   ;;  %s3125_s10 = inlined_call_operand.vmem [shape: f32[1,32], index: 10, kind: input, shape index: {}]   ;;  %s3126_s11 = inlined_call_operand.vmem [shape: f32[1,32], index: 11, kind: input, shape index: {}]   ;;  %s3127_s12 = inlined_call_operand.vmem [shape: f32[1,32], index: 12, kind: input, shape index: {}]   ;;  %s3128_s13 = inlined_call_operand.hbm [shape: f32[32,32], index: 13, kind: output, shape index: {}]   ;;  %s3129_s1 = inlined_call_operand.<no memory space> [shape: f32[1,1], index: 1, kind: input, shape index: {}]  }
   0x1   :  { %3143 = sst [smem:[#allocation25_spill]] %s3127_s12  ;;  %s18_s27 = sshll.u32 %s3116_s0, 4  ;;  %v22_v0 = vstv %s3129_s1  ;;  %s19_s27 = int_to_ptr.vmem [resolvable:$true] %s18_s27 }
   0x2   :  { %3144 = sst [smem:[#allocation26_spill]] %s3128_s13  ;;  %23 = vst [vmem:[#allocation9] sm:$0x1] %v22_v0  ;;  %s2401_s30 = scalar_lea.vmem %s19_s27, 16 }
   0x3   :  { %p2402_p0 = scmp.ne.s32.totalorder %s19_s27, %s2401_s30  ;;  %p2406_p1 = scmp.lt.s32.totalorder %s19_s27, %s19_s27 }
   0x4   :  { %p2407_p2 = scmp.lt.s32.totalorder %s2401_s30, %s2401_s30 }
   0x6   :  { %p2408_p3 = por %p2407_p2, %p2406_p1 }
   0x8   :  { %p2409_p4 = pnand %p2408_p3, %p2402_p0 }
   0xa   :  { %2412 = shalt.err (!%p2409_p4)  }
   0xb   :  { %s2511_s14 = smov [#allocation8]  }
   0xc   :  { %21 = dma.vmem_to_smem %s19_s27, 16, %s2511_s14, [#allocation7] }
   0xd   :  { %2473 = dma.done.wait [#allocation7], 16 }
   0xe   :  { %2474 = vsyncadd [#allocation7], 4294967280 }
   0xf   :  { %25 = sfence }
  0x10   :  { %26 = vsyncpa [#allocation11], 0 }
  0x11   :  { %28 = vsyncpa [#allocation11 + $0x1], 0  ;;  %s2597_s0 = smov 0   ;;  %s2599_s15 = smov 0  }
  0x12   :  { %s2601_s1 = smov 0   ;;  %s2603_s16 = smov 0  }
  0x13   :  { %s2605_s17 = smov 0   ;;  %s2607_s18 = smov 0  }
  0x14   :  { %s2609_s19 = smov 0   ;;  %s2611_s20 = smov 0  }
  0x15 LB: > { %3145 = sst [smem:[#allocation14_spill]] %s2481_s0  ;;  %s1999_s21 = sadd.s32 4294967295, %s2509_s20   ;;  %s2509_s20 = sphi %s2611_s20, %s34_s20   ;;  %s2505_s19 = sphi %s2609_s19, %s3172_s19   ;;  %s2501_s18 = sphi %s2607_s18, %s3171_s18   ;;  %s2497_s17 = sphi %s2605_s17, %s3170_s17   ;;  %s2493_s16 = sphi %s2603_s16, %s3169_s16   ;;  %s2489_s1 = sphi %s2601_s1, %s3168_s1   ;;  %s2485_s15 = sphi %s2599_s15, %s3167_s15   ;;  %s2481_s0 = sphi %s2597_s0, %s3166_s0  }
  0x16   : > { %3146 = sst [smem:[#allocation15_spill]] %s2485_s15  ;;  %s2000_s22 = sadd.s32 4294967294, %s2509_s20  }
  0x17   : > { %3147 = sst [smem:[#allocation16_spill]] %s2489_s1  ;;  %s49_s23 = sadd.s32 1, %s2501_s18 }
  0x18   : > { %3148 = sst [smem:[#allocation17_spill]] %s2501_s18  ;;  %p51_p5 = scmp.ge.s32.totalorder %s49_s23, 2 }
  0x19   : > { %3149 = sst [smem:[#allocation18_spill]] %s2505_s19  ;;  %s53_s24 = sadd.s32 1, %s2505_s19 }
  0x1a   : > { %3150 = sst [smem:[#allocation19_spill]] %s2509_s20  ;;  %p350_p6 = scmp.ne.s32.totalorder %s2489_s1, %s2485_s15 }
  0x1b   : > { %p351_p7 = scmp.eq.s32.totalorder %s1999_s21, 3  ;;  %s3174_s23 = smov (%p51_p5, %s49_s23), 0 }
  0x1c   : > { %3151 = sst [smem:[#allocation20_spill]] %s3174_s23  ;;  %s3176_s24 = smov (!%p51_p5, %s53_s24), %s2505_s19 }
  0x1d   : > { %p2646_p8 = por %p351_p7, %p350_p6  ;;  %p356_p9 = scmp.ne.s32.totalorder %s2485_s15, %s2481_s0 }
  0x1e   : > { %p55_p10 = scmp.ge.s32.totalorder %s3176_s24, 2  ;;  %p357_p11 = scmp.eq.s32.totalorder %s2000_s22, 3 }
  0x1f   : > { %s3152_s25 = scalar_select %p2646_p8, 1, 0 }
  0x20   : > { %p2003_p12 = scmp.ge.s32.totalorder %s2509_s20, 1  ;;  %p453_p13 = scmp.lt.s32.totalorder %s2509_s20, 5 }
  0x21   : > { %3153 = sst [smem:[#allocation21_spill]] %s3152_s25  ;;  %s3178_s24 = smov (%p55_p10, %s3176_s24), 0 }
  0x22   : > { %3154 = sst [smem:[#allocation22_spill]] %s3178_s24  ;;  %p2656_p0 = por %p357_p11, %p356_p9 }
  0x23   : > { %p454_p1 = pnand %p2003_p12, %p453_p13  ;;  %s337_s27 = ssub.s32 %s2505_s19, %s3178_s24 }
  0x24   : > { %s3155_s26 = scalar_select %p2656_p0, 1, 0 }
  0x25   : > { %s340_s28 = sadd.s32 1, %s2489_s1  ;;  %p338_p2 = scmp.eq.s32.totalorder %s337_s27, 0 }
  0x26   : > { %3156 = sst [smem:[#allocation23_spill]] %s3155_s26  ;;  %457 = sbr.rel (%p454_p1) target bundleno = 1850 (0x73a), region = 68 }
  0x27   : > { %s2664_s29 = scalar_select %p338_p2, %s2489_s1, %s340_s28  }
  0x28   : > { %s3138_s30 = sand.u32 (!%p454_p1), 1, %s2485_s15   ;;  %s2005_s14 = sshll.u32 (!%p454_p1), %s2497_s17, 1 }
  0x29   : > { %3157 = sst [smem:[#allocation24_spill]] %s2664_s29  ;;  %s2004_s21 = sshll.u32 (!%p454_p1), %s3138_s30, 4 }
  0x2a   : > { %p528_p3 = scmp.lt.s32.totalorder (!%p454_p1), %s2005_s14, 3  ;;  %p534_p4 = scmp.lt.s32.totalorder (!%p454_p1), %s2493_s16, 1 }
  0x2b   : > { %p571_p5 = scmp.eq.s32.totalorder (!%p454_p1), %s2493_s16, 0  ;;  %s2693_s27 = scalar_lea.vmem (!%p454_p1), [#allocation10], %s2004_s21 }
  0x2d   : > { %s3180_s14 = smov (!%p528_p3, %s2005_s14), 3  ;;  %v579_v1 = vld [vmem:[%s3122_s7] sm:$0xff] (%p571_p5)  ;;  %v580_v2 = vld [vmem:[%s3122_s7 + $0x8] sm:$0xff] (%p571_p5)  ;;  %v581_v3 = vld [vmem:[%s3122_s7 + $0x10] sm:$0xff] (%p571_p5)  ;;  %vm590_vm0 = vcmask (%p571_p5), 261120   ;;  %v2512_v7 = vmov (%p571_p5), 0.0  }
  0x2e   : > { %s535_s22 = scalar_select %p534_p4, %s2493_s16, 1 }
  0x2f   : > { %s2006_s24 = sshll.u32 %s3180_s14, 3  ;;  %s2012_s23 = sshll.u32 %s3180_s14, 1  ;;  %v2192_v4 = vpack.c.bf16 (%p571_p5), %v580_v2, %v579_v1  ;;  %v582_v5 = vld [vmem:[%s3122_s7 + $0x18] sm:$0xff] (%p571_p5)  ;;  %719 = vst.msk [vmem:[#allocation3] sm:$0xff] (%p571_p5), %vm590_vm0, %v2512_v7  ;;  %720 = vst.msk [vmem:[#allocation3 + $0x8] sm:$0xff] (%p571_p5), %vm590_vm0, %v2512_v7 }
  0x30   : > { %s2675_s19 = scalar_lea.vmem %s3117_s2, %s2006_s24  ;;  %s2089_s18 = sshll.u32 %s535_s22, 7  ;;  %v2196_v8 = vpack.c.bf16 (%p571_p5), %v582_v5, %v581_v3  ;;  %v2016_v10 = vld [vmem:[%s3123_s8] ss:$0 sm:$0xff] (%p571_p5)  ;;  %v2021_v12 = vld [vmem:[%s3121_s6 + $0x1] ss:$0 sm:$0xff] (%p571_p5) }
  0x31   : > { %s2680_s26 = scalar_lea.vmem %s3118_s3, %s2089_s18  ;;  %s2685_s30 = scalar_lea.vmem %s3119_s4, %s2089_s18  ;;  %v577_v6 = vld [vmem:[%s2675_s19] sm:$0xff] (%p571_p5)  ;;  %2193 = vmatprep.subr.bf16.mxu0 (%p571_p5), %v2192_v4  ;;  %v578_v9 = vld [vmem:[%s2675_s19 + $0x8] sm:$0xff] (%p571_p5) }
  0x32   : > { %s2013_s13 = sshll.u32 %s535_s22, 3  ;;  %576 = sbr.rel (!%p571_p5) target bundleno = 278 (0x116), region = 72  ;;  %2178 = vmatprep.mubr.msk.f32.mxu0 (%p571_p5), %vm590_vm0, %v577_v6  ;;  %2195 = vmatpush3.bf16.msra.mxu0 (%p571_p5), %v2192_v4  ;;  %v2019_v11 = vld [vmem:[%s3121_s6] ss:$0 sm:$0xff] (%p571_p5)  ;;  %v2023_v14 = vld [vmem:[%s3121_s6 + $0x2] ss:$0 sm:$0xff] (%p571_p5) }
  0x33   : > { %s564_s25 = sadd.s32 %s2013_s13, %s2012_s23  ;;  %2197 = vmatprep.subr.bf16.mxu0 (%p571_p5), %v2196_v8  ;;  %v2025_v15 = vld [vmem:[%s3121_s6 + $0x3] ss:$0 sm:$0xff] (%p571_p5) }
  0x34   : > { %s2014_s14 = sshll.u32 %s564_s25, 2 }
  0x35   : > { %s2691_s24 = scalar_lea.vmem %s3120_s5, %s2014_s14 }
  0x36   : > { %2199 = vmatpush3.bf16.msra.mxu0 (%p571_p5), %v2196_v8 }
  0x39   : > { %2179 = vmatmul.mubr.msk.f32.vlgmr.msra.gmra.mrb[0].mxu0 %vm590_vm0, %v578_v9 }
 0x10c   : > { %v2180_v13 = vpop.f32.mrb[0].mxu0 }
 0x10d   : > { %v669_v16 = vadd.f32 %v2180_v13, %v2016_v10  ;;  %v663_v17 = vpop.f32.mrb[1].mxu0 }
 0x10e   : > { %v664_v18 = vadd.f32 %v2016_v10, %v663_v17 }
 0x10f   : > { %v680_v19 = vmul.f32 %v2019_v11, %v669_v16  ;;  %v692_v20 = vmul.f32 %v2021_v12, %v669_v16  ;;  %v704_v21 = vmul.f32 %v2023_v14, %v669_v16  ;;  %v716_v22 = vmul.f32 %v2025_v15, %v669_v16 }
 0x110   : > { %v679_v23 = vmul.f32 %v2019_v11, %v664_v18  ;;  %v691_v24 = vmul.f32 %v2021_v12, %v664_v18  ;;  %v703_v25 = vmul.f32 %v2023_v14, %v664_v18  ;;  %v715_v26 = vmul.f32 %v2025_v15, %v664_v18 }
 0x112   : > { %v681_v27 = vpack.c.bf16 %v680_v19, %v679_v23  ;;  %v693_v28 = vpack.c.bf16 %v692_v20, %v691_v24  ;;  %v705_v29 = vpack.c.bf16 %v704_v21, %v703_v25  ;;  %v717_v30 = vpack.c.bf16 %v716_v22, %v715_v26 }
 0x114   : > { %682 = vst.msk [vmem:[#allocation2] sm:$0xff] %vm590_vm0, %v681_v27  ;;  %694 = vst.msk [vmem:[#allocation2 + $0x8] sm:$0xff] %vm590_vm0, %v693_v28 }
 0x115   : > { %706 = vst.msk [vmem:[#allocation2 + $0x10] sm:$0xff] %vm590_vm0, %v705_v29  ;;  %718 = vst.msk [vmem:[#allocation2 + $0x18] sm:$0xff] %vm590_vm0, %v717_v30 }
 0x116 PF: > { %vm724_vm1 = vcmask 7168   ;;  %s2026_s13 = sshll.u32 %s2493_s16, 1  ;;  %vm741_vm2 = vcmask 261120   ;;  %v2513_v31 = vmov -1e+30   ;;  %v2514_v32 = vmov 0.0  }
 0x117   : > { %725 = vst.msk [vmem:[#allocation5] sm:$0xff] %vm724_vm1, %v2513_v31  ;;  %726 = vst.msk [vmem:[#allocation5 + $0x8] sm:$0xff] %vm724_vm1, %v2513_v31  ;;  %s745_s20 = sadd.s32 %s2497_s17, %s2026_s13 }
 0x118   : > { %727 = vst.msk [vmem:[#allocation5 + $0x10] sm:$0xff] %vm724_vm1, %v2513_v31  ;;  %728 = vst.msk [vmem:[#allocation5 + $0x18] sm:$0xff] %vm724_vm1, %v2513_v31  ;;  %s747_s12 = sld [smem:[#allocation8 + %s745_s20]] }
 0x119   : > { %729 = vst.msk [vmem:[#allocation5 + $0x20] sm:$0xff] %vm724_vm1, %v2513_v31  ;;  %730 = vst.msk [vmem:[#allocation5 + $0x28] sm:$0xff] %vm724_vm1, %v2513_v31 }
 0x11a   : > { %731 = vst.msk [vmem:[#allocation5 + $0x30] sm:$0xff] %vm724_vm1, %v2513_v31  ;;  %732 = vst.msk [vmem:[#allocation5 + $0x38] sm:$0xff] %vm724_vm1, %v2513_v31 }
 0x11b   : > { %733 = vst.msk [vmem:[#allocation6] sm:$0xff] %vm724_vm1, %v2514_v32  ;;  %734 = vst.msk [vmem:[#allocation6 + $0x8] sm:$0xff] %vm724_vm1, %v2514_v32 }
 0x11c   : > { %735 = vst.msk [vmem:[#allocation6 + $0x10] sm:$0xff] %vm724_vm1, %v2514_v32  ;;  %736 = vst.msk [vmem:[#allocation6 + $0x18] sm:$0xff] %vm724_vm1, %v2514_v32 }
 0x11d   : > { %737 = vst.msk [vmem:[#allocation6 + $0x20] sm:$0xff] %vm724_vm1, %v2514_v32  ;;  %738 = vst.msk [vmem:[#allocation6 + $0x28] sm:$0xff] %vm724_vm1, %v2514_v32 }
 0x11e   : > { %739 = vst.msk [vmem:[#allocation6 + $0x30] sm:$0xff] %vm724_vm1, %v2514_v32  ;;  %740 = vst.msk [vmem:[#allocation6 + $0x38] sm:$0xff] %vm724_vm1, %v2514_v32  ;;  %p2027_p6 = scmp.le.s32.totalorder %s747_s12, 0 }
 0x11f   : > { %742 = vst.msk [vmem:[#allocation4] sm:$0xff] %vm741_vm2, %v2514_v32  ;;  %743 = vst.msk [vmem:[#allocation4 + $0x8] sm:$0xff] %vm741_vm2, %v2514_v32  ;;  %v2298_v33 = vld [vmem:[%s2680_s26 + $0x40] sm:$0xff] (!%p2027_p6)   ;;  %v2300_v35 = vld [vmem:[%s2680_s26 + $0x48] sm:$0xff] (!%p2027_p6)   ;;  %v2515_v14 = vmov (!%p2027_p6), 0  }
 0x120   : > { %751 = sbr.rel (%p2027_p6) target bundleno = 1113 (0x459), region = 80  ;;  %v2299_v34 = vld [vmem:[%s2680_s26] sm:$0xff] (!%p2027_p6)   ;;  %2208 = vmatprep.subr.msk.bf16.mxu0 (!%p2027_p6), %vm741_vm2, %v2298_v33  ;;  %v2301_v37 = vld [vmem:[%s2680_s26 + $0x8] sm:$0xff] (!%p2027_p6)   ;;  %v2302_v39 = vld [vmem:[%s2680_s26 + $0x50] sm:$0xff] (!%p2027_p6)   ;;  %2296 = vset.pattern.permute.xlu0 (!%p2027_p6), %v2515_v14 }
 0x121   : > { %v920_v36 = vsel (!%p2027_p6), %vm741_vm2, %v2299_v34, 0  ;;  %v923_v38 = vsel (!%p2027_p6), %vm741_vm2, %v2301_v37, 0  ;;  %v2303_v40 = vld [vmem:[%s2680_s26 + $0x10] sm:$0xff] (!%p2027_p6)   ;;  %v2305_v41 = vld [vmem:[%s2680_s26 + $0x18] sm:$0xff] (!%p2027_p6)   ;;  %v822_v43 = vld [vmem:[#allocation2] sm:$0xff] (!%p2027_p6)  ;;  %2297 = vset.pattern.permute.xlu1 (!%p2027_p6), %v2515_v14 }
 0x122   : > { %2101 = vmatpush3.bf16.xpose.msra.mxu0 (!%p2027_p6), %v920_v36  ;;  %v2304_v42 = vld [vmem:[%s2680_s26 + $0x58] sm:$0xff] (!%p2027_p6)   ;;  %v926_v44 = vsel (!%p2027_p6), %vm741_vm2, %v2303_v40, 0  ;;  %v929_v45 = vsel (!%p2027_p6), %vm741_vm2, %v2305_v41, 0  ;;  %2116 = vmatprep.mubr.msk.bf16.mxu0 (!%p2027_p6), %vm741_vm2, %v822_v43  ;;  %v2306_v46 = vld [vmem:[%s2680_s26 + $0x60] sm:$0xff] (!%p2027_p6)   ;;  %v2308_v49 = vld [vmem:[%s2680_s26 + $0x68] sm:$0xff] (!%p2027_p6)  }
 0x123   : > { %2209 = vmatprep.subr.msk.bf16.mxu0 (!%p2027_p6), %vm741_vm2, %v2300_v35  ;;  %v2307_v47 = vld [vmem:[%s2680_s26 + $0x20] sm:$0xff] (!%p2027_p6)   ;;  %v2309_v50 = vld [vmem:[%s2680_s26 + $0x28] sm:$0xff] (!%p2027_p6)   ;;  %v2310_v52 = vld [vmem:[%s2680_s26 + $0x70] sm:$0xff] (!%p2027_p6)  }
 0x124   : > { %v932_v48 = vsel (!%p2027_p6), %vm741_vm2, %v2307_v47, 0  ;;  %v935_v51 = vsel (!%p2027_p6), %vm741_vm2, %v2309_v50, 0  ;;  %v2311_v53 = vld [vmem:[%s2680_s26 + $0x30] sm:$0xff] (!%p2027_p6)   ;;  %v2312_v55 = vld [vmem:[%s2680_s26 + $0x78] sm:$0xff] (!%p2027_p6)   ;;  %v823_v58 = vld [vmem:[#allocation2 + $0x8] sm:$0xff] (!%p2027_p6) }
 0x125   : > { %v938_v54 = vsel (!%p2027_p6), %vm741_vm2, %v2311_v53, 0  ;;  %v2313_v56 = vld [vmem:[%s2680_s26 + $0x38] sm:$0xff] (!%p2027_p6)   ;;  %v824_v59 = vld [vmem:[#allocation2 + $0x10] sm:$0xff] (!%p2027_p6)  ;;  %v2314_v22 = vld [vmem:[%s2685_s30 + $0x40] sm:$0xff] (!%p2027_p6)  }
 0x126   : > { %v941_v57 = vsel (!%p2027_p6), %vm741_vm2, %v2313_v56, 0  ;;  %v825_v60 = vld [vmem:[#allocation2 + $0x18] sm:$0xff] (!%p2027_p6)  ;;  %v2315_v23 = vld [vmem:[%s2685_s30] sm:$0xff] (!%p2027_p6)   ;;  %v2316_v24 = vld [vmem:[%s2685_s30 + $0x48] sm:$0xff] (!%p2027_p6)   ;;  %2124 = vmatprep.subr.bf16.mxu1 (!%p2027_p6), %v2314_v22 }
 0x127   : > { %2125 = vmatpush3.bf16.msra.mxu1 %v2315_v23  ;;  %v2317_v25 = vld [vmem:[%s2685_s30 + $0x8] sm:$0xff]   ;;  %v1040_v26 = vld [vmem:[#allocation5] sm:$0xff]  ;;  %v2318_v30 = vld [vmem:[%s2685_s30 + $0x50] sm:$0xff]  }
 0x128   : > { %2126 = vmatprep.subr.bf16.mxu1 %v2316_v24  ;;  %v1041_v29 = vld [vmem:[#allocation5 + $0x8] sm:$0xff]  ;;  %v2319_v32 = vld [vmem:[%s2685_s30 + $0x10] sm:$0xff]   ;;  %v2320_v37 = vld [vmem:[%s2685_s30 + $0x58] sm:$0xff]  }
 0x129   : > { %v1042_v36 = vld [vmem:[#allocation5 + $0x10] sm:$0xff]  ;;  %v1044_v50 = vld [vmem:[#allocation5 + $0x20] sm:$0xff]  ;;  %v2325_v53 = vld [vmem:[%s2685_s30 + $0x28] sm:$0xff]  }
 0x12a   : > { %2103 = vmatpush3.bf16.xpose.msra.mxu0 %v923_v38  ;;  %v2329_v22 = vld [vmem:[%s2685_s30 + $0x38] sm:$0xff]  }
 0x12b   : > { %2210 = vmatprep.subr.msk.bf16.mxu0 %vm741_vm2, %v2302_v39  ;;  %2127 = vmatpush3.bf16.msra.mxu1 %v2317_v25  ;;  %v2321_v39 = vld [vmem:[%s2685_s30 + $0x18] sm:$0xff]  }
 0x12c   : > { %2128 = vmatprep.subr.bf16.mxu1 %v2318_v30  ;;  %v2870_v24 = vld [vmem:[#allocation5 + $0x38] sm:$0xff] }
 0x12f   : > { %2129 = vmatpush3.bf16.msra.mxu1 %v2319_v32 }
 0x130   : > { %2130 = vmatprep.subr.bf16.mxu1 %v2320_v37 }
 0x132   : > { %2105 = vmatpush3.bf16.xpose.msra.mxu0 %v926_v44  ;;  %v2322_v44 = vld [vmem:[%s2685_s30 + $0x60] sm:$0xff]  }
 0x133   : > { %2211 = vmatprep.subr.msk.bf16.mxu0 %vm741_vm2, %v2304_v42  ;;  %2131 = vmatpush3.bf16.msra.mxu1 %v2321_v39 }
 0x134   : > { %2132 = vmatprep.subr.bf16.mxu1 %v2322_v44 }
 0x13a   : > { %2107 = vmatpush3.bf16.xpose.msra.mxu0 %v929_v45 }
 0x13b   : > { %2212 = vmatprep.subr.msk.bf16.mxu0 %vm741_vm2, %v2306_v46  ;;  %v2323_v46 = vld [vmem:[%s2685_s30 + $0x20] sm:$0xff]  }
 0x13c   : > { %2133 = vmatpush3.bf16.msra.mxu1 %v2323_v46  ;;  %v816_v46 = vld [vmem:[%s2691_s24] sm:$0xff] }
 0x142   : > { %2109 = vmatpush3.bf16.xpose.msra.mxu0 %v932_v48 }
 0x143   : > { %2213 = vmatprep.subr.msk.bf16.mxu0 %vm741_vm2, %v2308_v49 }
 0x14a   : > { %2111 = vmatpush3.bf16.xpose.msra.mxu0 %v935_v51  ;;  %v2324_v51 = vld [vmem:[%s2685_s30 + $0x68] sm:$0xff]  }
 0x14b   : > { %2214 = vmatprep.subr.msk.bf16.mxu0 %vm741_vm2, %v2310_v52  ;;  %2134 = vmatprep.subr.bf16.mxu1 %v2324_v51  ;;  %v817_v51 = vld [vmem:[%s2691_s24 + $0x8] sm:$0xff] }
 0x14c   : > { %2135 = vmatpush3.bf16.msra.mxu1 %v2325_v53 }
 0x152   : > { %2113 = vmatpush3.bf16.xpose.msra.mxu0 %v938_v54 }
 0x153   : > { %2215 = vmatprep.subr.msk.bf16.mxu0 %vm741_vm2, %v2312_v55  ;;  %v1045_v55 = vld [vmem:[#allocation5 + $0x28] sm:$0xff] }
 0x15a   : > { %2115 = vmatpush3.bf16.xpose.msra.mxu0 %v941_v57 }
 0x161   : > { %2117 = vmatmul.mubr.msk.bf16.vlgmr.msra.gmra.mrb[0].mxu0 %vm741_vm2, %v822_v43  ;;  %v1043_v43 = vld [vmem:[#allocation5 + $0x18] sm:$0xff] }
 0x162   : > { %2118 = vmatprep.mubr.msk.bf16.mxu0 %vm741_vm2, %v823_v58 }
 0x169   : > { %2119 = vmatmul.mubr.msk.bf16.gmra.mrb[4].mxu0 %vm741_vm2, %v823_v58 }
 0x16a   : > { %2120 = vmatprep.mubr.msk.bf16.mxu0 %vm741_vm2, %v824_v59 }
 0x171   : > { %2121 = vmatmul.mubr.msk.bf16.gmra.mrb[8].mxu0 %vm741_vm2, %v824_v59 }
 0x172   : > { %2122 = vmatprep.mubr.msk.bf16.mxu0 %vm741_vm2, %v825_v60 }
 0x179   : > { %2123 = vmatmul.mubr.msk.bf16.gmra.mrb[12].mxu0 %vm741_vm2, %v825_v60  ;;  %v2326_v60 = vld [vmem:[%s2685_s30 + $0x70] sm:$0xff]  }
 0x17a   : > { %2136 = vmatprep.subr.bf16.mxu1 %v2326_v60 }
 0x234   : > { %v2792_v61 = vpop.f32.mrb[0].mxu0 }
 0x235   : > { %v2794_v62 = vpop.f32.mrb[1].mxu0 }
 0x236   : > { %v2796_v63 = vpop.f32.mrb[2].mxu0  ;;  %v1048_v0 = vmax.f32 %v2792_v61, %v2794_v62 }
 0x237   : > { %v2800_v1 = vpop.f32.mrb[3].mxu0 }
 0x238   : > { %1049 = vmax.xlane.f32.xlu0 %v1048_v0  ;;  %v1051_v2 = vmax.f32 %v2796_v63, %v2800_v1 }
 0x23c   : > { %1052 = vmax.xlane.f32.xlu0 %v1051_v2  ;;  %v2804_v3 = vpop.f32.mrb[4].mxu0 }
 0x23d   : > { %v2806_v4 = vpop.f32.mrb[5].mxu0 }
 0x23e   : > { %v2808_v5 = vpop.f32.mrb[6].mxu0  ;;  %v1054_v6 = vmax.f32 %v2804_v3, %v2806_v4 }
 0x23f   : > { %v2812_v7 = vpop.f32.mrb[7].mxu0 }
 0x240   : > { %1055 = vmax.xlane.f32.xlu1 %v1054_v6  ;;  %v1057_v8 = vmax.f32 %v2808_v5, %v2812_v7  ;;  %v2327_v6 = vld [vmem:[%s2685_s30 + $0x30] sm:$0xff]  }
 0x241   : > { %2137 = vmatpush3.bf16.msra.mxu1 %v2327_v6 }
 0x244   : > { %1058 = vmax.xlane.f32.xlu1 %v1057_v8  ;;  %v2816_v9 = vpop.f32.mrb[8].mxu0 }
 0x245   : > { %v2818_v10 = vpop.f32.mrb[9].mxu0 }
 0x246   : > { %v2820_v11 = vpop.f32.mrb[10].mxu0  ;;  %v1060_v12 = vmax.f32 %v2816_v9, %v2818_v10 }
 0x247   : > { %v2824_v13 = vpop.f32.mrb[11].mxu0 }
 0x248   : > { %1061 = vmax.xlane.f32.xlu0 %v1060_v12  ;;  %v1063_v15 = vmax.f32 %v2820_v11, %v2824_v13 }
 0x24a   : > { %1064 = vmax.xlane.f32.xlu1 %v1063_v15  ;;  %v2866_v15 = vld [vmem:[#allocation5 + $0x30] sm:$0xff] }
 0x24c   : > { %v2828_v16 = vpop.f32.mrb[12].mxu0 }
 0x24d   : > { %v2830_v17 = vpop.f32.mrb[13].mxu0 }
 0x24e   : > { %v2832_v18 = vpop.f32.mrb[14].mxu0  ;;  %v1066_v19 = vmax.f32 %v2828_v16, %v2830_v17 }
 0x24f   : > { %v2836_v20 = vpop.f32.mrb[15].mxu0 }
 0x250   : > { %v1069_v21 = vmax.f32 %v2832_v18, %v2836_v20  ;;  %1067 = vmax.xlane.f32.xlu0 %v1066_v19  ;;  %v2328_v19 = vld [vmem:[%s2685_s30 + $0x78] sm:$0xff]  }
 0x251   : > { %2138 = vmatprep.subr.bf16.mxu1 %v2328_v19 }
 0x252   : > { %1070 = vmax.xlane.f32.xlu1 %v1069_v21  ;;  %2139 = vmatpush3.bf16.msra.mxu1 %v2329_v22 }
 0x2c5   : > { %v1050_v27 = vpop.xlane.xlu0 %1049 }
 0x2c6   : > { %v1072_v28 = vmax.f32 %v1040_v26, %v1050_v27 }
 0x2c8   : > { %v1080_v31 = vsub.f32 %v1040_v26, %v1072_v28  ;;  %1265 = vst.msk [vmem:[#allocation5] sm:$0xff] %vm724_vm1, %v1072_v28  ;;  %1106 = vperm.xlu0 %2296, %v1072_v28  }
 0x2c9   : > { %v1053_v33 = vpop.xlane.xlu0 %1052 }
 0x2ca   : > { %v1088_v34 = vmul.f32 1.442695, %v1080_v31  ;;  %v1073_v35 = vmax.f32 %v1041_v29, %v1053_v33 }
 0x2cc   : > { %2330 = vpow2.f32 %v1088_v34  ;;  %v1081_v38 = vsub.f32 %v1041_v29, %v1073_v35  ;;  %1266 = vst.msk [vmem:[#allocation5 + $0x8] sm:$0xff] %vm724_vm1, %v1073_v35  ;;  %1111 = vperm.xlu1 %2297, %v1073_v35  }
 0x2cd   : > { %v1056_v40 = vpop.xlane.xlu1 %1055 }
 0x2ce   : > { %v1090_v41 = vmul.f32 1.442695, %v1081_v38  ;;  %v1074_v42 = vmax.f32 %v1042_v36, %v1056_v40 }
 0x2d0   : > { %2332 = vpow2.f32 %v1090_v41  ;;  %v1082_v45 = vsub.f32 %v1042_v36, %v1074_v42  ;;  %1267 = vst.msk [vmem:[#allocation5 + $0x10] sm:$0xff] %vm724_vm1, %v1074_v42  ;;  %1116 = vperm.xlu1 %2297, %v1074_v42  }
 0x2d1   : > { %v1059_v47 = vpop.xlane.xlu1 %1058 }
 0x2d2   : > { %v1092_v48 = vmul.f32 1.442695, %v1082_v45  ;;  %v1075_v49 = vmax.f32 %v1043_v43, %v1059_v47 }
 0x2d4   : > { %2334 = vpow2.f32 %v1092_v48  ;;  %v1083_v52 = vsub.f32 %v1043_v43, %v1075_v49  ;;  %1268 = vst.msk [vmem:[#allocation5 + $0x18] sm:$0xff] %vm724_vm1, %v1075_v49  ;;  %1121 = vperm.xlu1 %2297, %v1075_v49   ;;  %v2907_v49 = vunpack.c.l.bf16 %v816_v46 }
 0x2d5   : > { %v1062_v54 = vpop.xlane.xlu0 %1061 }
 0x2d6   : > { %v2856_v56 = vpop.eup %2330  ;;  %v1094_v57 = vmul.f32 1.442695, %v1083_v52  ;;  %v1076_v58 = vmax.f32 %v1044_v50, %v1062_v54 }
 0x2d7   : > { %v1065_v59 = vpop.xlane.xlu1 %1064  ;;  %1445 = vperm.xlu0 %2296, %v2856_v56  }
 0x2d8   : > { %2336 = vpow2.f32 %v1094_v57  ;;  %v1084_v0 = vsub.f32 %v1044_v50, %v1076_v58  ;;  %1269 = vst.msk [vmem:[#allocation5 + $0x20] sm:$0xff] %vm724_vm1, %v1076_v58  ;;  %v1077_v2 = vmax.f32 %v1045_v55, %v1065_v59  ;;  %1126 = vperm.xlu1 %2297, %v1076_v58   ;;  %v2911_v50 = vunpack.c.h.bf16 %v816_v46 }
 0x2d9   : > { %v2915_v58 = vunpack.c.h.bf16 %v817_v51  ;;  %v2917_v59 = vunpack.c.l.bf16 %v817_v51 }
 0x2da   : > { %v2862_v8 = vpop.eup %2332  ;;  %v1096_v12 = vmul.f32 1.442695, %v1084_v0  ;;  %v1085_v14 = vsub.f32 %v1045_v55, %v1077_v2  ;;  %1270 = vst.msk [vmem:[#allocation5 + $0x28] sm:$0xff] %vm724_vm1, %v1077_v2 }
 0x2db   : > { %1450 = vperm.xlu0 %2296, %v2862_v8  }
 0x2dc   : > { %2338 = vpow2.f32 %v1096_v12  ;;  %v1098_v21 = vmul.f32 1.442695, %v1085_v14  ;;  %1131 = vperm.xlu1 %2297, %v1077_v2  }
 0x2dd   : > { %v1068_v23 = vpop.xlane.xlu0 %1067 }
 0x2de   : > { %v2872_v25 = vpop.eup %2334  ;;  %v2875_v26 = vmax.f32 %v2866_v15, %v1068_v23  ;;  %2340 = vpow2.f32 %v1098_v21  ;;  %v2926_v23 = vld [vmem:[%s3121_s6] ss:$0 sm:$0xff] }
 0x2df   : > { %1467 = vperm.xlu0 %2296, %v2872_v25   ;;  %v1071_v27 = vpop.xlane.xlu1 %1070 }
 0x2e0   : > { %v1086_v28 = vsub.f32 %v2866_v15, %v2875_v26  ;;  %1271 = vst.msk [vmem:[#allocation5 + $0x30] sm:$0xff] %vm724_vm1, %v2875_v26  ;;  %v2883_v29 = vmax.f32 %v2870_v24, %v1071_v27  ;;  %1136 = vperm.xlu1 %2297, %v2875_v26   ;;  %v2933_v27 = vld [vmem:[%s3121_s6 + $0x1] ss:$0 sm:$0xff] }
 0x2e2   : > { %v2886_v30 = vpop.eup %2336  ;;  %v1087_v31 = vsub.f32 %v2870_v24, %v2883_v29  ;;  %1272 = vst.msk [vmem:[#allocation5 + $0x38] sm:$0xff] %vm724_vm1, %v2883_v29 }
 0x2e3   : > { %1472 = vperm.xlu0 %2296, %v2886_v30  }
 0x2e4   : > { %1141 = vperm.xlu1 %2297, %v2883_v29  }
 0x2e6   : > { %v2894_v32 = vpop.eup %2338 }
 0x2e7   : > { %1493 = vperm.xlu0 %2296, %v2894_v32  }
 0x2e8   : > { %v2897_v33 = vpop.eup %2340 }
 0x2eb   : > { %1498 = vperm.xlu0 %2296, %v2897_v33  }
 0x347   : > { %v1107_v34 = vpop.permute.xlu0 %1106 }
 0x348   : > { %v1144_v35 = vsub.f32 %v2792_v61, %v1107_v34  ;;  %v1145_v36 = vsub.f32 %v2794_v62, %v1107_v34 }
 0x34a   : > { %v1160_v37 = vmul.f32 1.442695, %v1144_v35  ;;  %v1162_v38 = vmul.f32 1.442695, %v1145_v36 }
 0x34b   : > { %v1112_v39 = vpop.permute.xlu1 %1111 }
 0x34c   : > { %2342 = vpow2.f32 %v1160_v37  ;;  %v1146_v40 = vsub.f32 %v2796_v63, %v1112_v39  ;;  %v1147_v41 = vsub.f32 %v2800_v1, %v1112_v39 }
 0x34d   : > { %2344 = vpow2.f32 %v1162_v38 }
 0x34e   : > { %v1164_v42 = vmul.f32 1.442695, %v1146_v40  ;;  %v1166_v43 = vmul.f32 1.442695, %v1147_v41 }
 0x34f   : > { %v1117_v44 = vpop.permute.xlu1 %1116 }
 0x350   : > { %2346 = vpow2.f32 %v1164_v42  ;;  %v1148_v45 = vsub.f32 %v2804_v3, %v1117_v44  ;;  %v1149_v61 = vsub.f32 %v2806_v4, %v1117_v44 }
 0x351   : > { %2348 = vpow2.f32 %v1166_v43 }
 0x352   : > { %v1168_v62 = vmul.f32 1.442695, %v1148_v45  ;;  %v1170_v47 = vmul.f32 1.442695, %v1149_v61 }
 0x353   : > { %v1122_v48 = vpop.permute.xlu1 %1121 }
 0x354   : > { %2350 = vpow2.f32 %v1168_v62  ;;  %v1150_v63 = vsub.f32 %v2808_v5, %v1122_v48  ;;  %v1151_v1 = vsub.f32 %v2812_v7, %v1122_v48 }
 0x355   : > { %2352 = vpow2.f32 %v1170_v47 }
 0x356   : > { %v2343_v52 = vpop.eup %2342  ;;  %v1172_v3 = vmul.f32 1.442695, %v1150_v63  ;;  %v1174_v53 = vmul.f32 1.442695, %v1151_v1  ;;  %v1446_v4 = vpop.permute.xlu0 %1445 }
 0x357   : > { %v2345_v54 = vpop.eup %2344  ;;  %v1127_v55 = vpop.permute.xlu1 %1126  ;;  %v1192_v57 = vmul.f32 %v2343_v52, %v2907_v49 }
 0x358   : > { %2354 = vpow2.f32 %v1172_v3  ;;  %v1152_v5 = vsub.f32 %v2816_v9, %v1127_v55  ;;  %v1153_v7 = vsub.f32 %v2818_v10, %v1127_v55  ;;  %v1193_v60 = vmul.f32 %v2345_v54, %v2911_v50  ;;  %v2950_v55 = vld [vmem:[%s3121_s6 + $0x2] ss:$0 sm:$0xff] }
 0x359   : > { %2356 = vpow2.f32 %v1174_v53 }
 0x35a   : > { %v2347_v0 = vpop.eup %2346  ;;  %v1176_v2 = vmul.f32 1.442695, %v1152_v5  ;;  %v1178_v6 = vmul.f32 1.442695, %v1153_v7  ;;  %v1451_v12 = vpop.permute.xlu0 %1450  ;;  %v1224_v14 = vadd.f32 %v1193_v60, %v1192_v57 }
 0x35b   : > { %v2349_v19 = vpop.eup %2348  ;;  %v1132_v21 = vpop.permute.xlu1 %1131  ;;  %v1194_v22 = vmul.f32 %v2347_v0, %v2917_v59  ;;  %v1460_v3 = vmul.f32 %v2926_v23, %v1451_v12 }
 0x35c   : > { %2358 = vpow2.f32 %v1176_v2  ;;  %1225 = vadd.xlane.f32.xlu1 %v1224_v14  ;;  %v1154_v9 = vsub.f32 %v2820_v11, %v1132_v21  ;;  %v1155_v10 = vsub.f32 %v2824_v13, %v1132_v21  ;;  %v1195_v34 = vmul.f32 %v2349_v19, %v2915_v58 }
 0x35d   : > { %2360 = vpow2.f32 %v1178_v6  ;;  %v1273_v35 = vpack.c.bf16 %v1194_v22, %v1192_v57  ;;  %v1459_v11 = vmul.f32 %v2926_v23, %v1446_v4 }
 0x35e   : > { %v2351_v36 = vpop.eup %2350  ;;  %v1180_v37 = vmul.f32 1.442695, %v1154_v9  ;;  %v1182_v38 = vmul.f32 1.442695, %v1155_v10  ;;  %v1468_v39 = vpop.permute.xlu0 %1467  ;;  %v1274_v40 = vpack.c.bf16 %v1195_v34, %v1193_v60  ;;  %v1227_v41 = vadd.f32 %v1195_v34, %v1194_v22 }
 0x35f   : > { %v2353_v42 = vpop.eup %2352  ;;  %v1481_v13 = vmul.f32 %v2933_v27, %v1468_v39  ;;  %v1137_v43 = vpop.permute.xlu1 %1136  ;;  %v1196_v44 = vmul.f32 %v2351_v36, %v2907_v49 }
 0x360   : > { %2362 = vpow2.f32 %v1180_v37  ;;  %1409 = vmatprep.mubr.bf16.mxu1 %v1274_v40  ;;  %1228 = vadd.xlane.f32.xlu0 %v1227_v41  ;;  %v1156_v45 = vsub.f32 %v2828_v16, %v1137_v43  ;;  %v1157_v61 = vsub.f32 %v2830_v17, %v1137_v43  ;;  %v1197_v46 = vmul.f32 %v2353_v42, %v2911_v50 }
 0x361   : > { %2364 = vpow2.f32 %v1182_v38  ;;  %v1485_v62 = vadd.f32 %v1481_v13, %v1459_v11  ;;  %1410 = vmatmul.mubr.bf16.vlgmr.msra.gmra.mrb[0].mxu1 %v1273_v35 }
 0x362   : > { %v2355_v47 = vpop.eup %2354  ;;  %v1184_v48 = vmul.f32 1.442695, %v1156_v45  ;;  %v1186_v63 = vmul.f32 1.442695, %v1157_v61  ;;  %v1473_v1 = vpop.permute.xlu0 %1472  ;;  %v1230_v51 = vadd.f32 %v1197_v46, %v1196_v44 }
 0x363   : > { %v2357_v52 = vpop.eup %2356  ;;  %v1482_v53 = vmul.f32 %v2933_v27, %v1473_v1  ;;  %v1142_v4 = vpop.permute.xlu1 %1141  ;;  %v1198_v16 = vmul.f32 %v2355_v47, %v2917_v59  ;;  %v1208_v47 = vld [vmem:[#allocation6] sm:$0xff] }
 0x364   : > { %2366 = vpow2.f32 %v1184_v48  ;;  %1231 = vadd.xlane.f32.xlu1 %v1230_v51  ;;  %v1158_v17 = vsub.f32 %v2832_v18, %v1142_v4  ;;  %v1159_v54 = vsub.f32 %v2836_v20, %v1142_v4  ;;  %v1199_v57 = vmul.f32 %v2357_v52, %v2915_v58 }
 0x365   : > { %2368 = vpow2.f32 %v1186_v63  ;;  %v2953_v5 = vadd.f32 %v1482_v53, %v1460_v3  ;;  %v1275_v7 = vpack.c.bf16 %v1198_v16, %v1196_v44  ;;  %v1100_v20 = vmul.f32 1.442695, %v1086_v28  ;;  %v1209_v63 = vld [vmem:[#allocation6 + $0x8] sm:$0xff]  ;;  %v1210_v3 = vld [vmem:[#allocation6 + $0x10] sm:$0xff] }
 0x366   : > { %v2359_v60 = vpop.eup %2358  ;;  %v1188_v0 = vmul.f32 1.442695, %v1158_v17  ;;  %v1190_v2 = vmul.f32 1.442695, %v1159_v54  ;;  %v1494_v6 = vpop.permute.xlu0 %1493  ;;  %v1276_v12 = vpack.c.bf16 %v1199_v57, %v1197_v46  ;;  %v1233_v14 = vadd.f32 %v1199_v57, %v1198_v16  ;;  %v1212_v17 = vld [vmem:[#allocation6 + $0x20] sm:$0xff] }
 0x367   : > { %v2361_v18 = vpop.eup %2360  ;;  %v1507_v19 = vmul.f32 %v2950_v55, %v1494_v6  ;;  %v1200_v21 = vmul.f32 %v2359_v60, %v2907_v49  ;;  %v1217_v51 = vmul.f32 %v2862_v8, %v1209_v63  ;;  %v1218_v24 = vmul.f32 %v2872_v25, %v1210_v3 }
 0x368   : > { %2370 = vpow2.f32 %v1188_v0  ;;  %1417 = vmatprep.mubr.bf16.mxu1 %v1276_v12  ;;  %1234 = vadd.xlane.f32.xlu1 %v1233_v14  ;;  %v1201_v22 = vmul.f32 %v2361_v18, %v2911_v50  ;;  %v1220_v8 = vmul.f32 %v2894_v32, %v1212_v17  ;;  %v1215_v14 = vld [vmem:[#allocation6 + $0x38] sm:$0xff] }
 0x369   : > { %2372 = vpow2.f32 %v1190_v2  ;;  %v2961_v9 = vadd.f32 %v1507_v19, %v1485_v62  ;;  %1418 = vmatmul.mubr.bf16.gmra.mrb[4].mxu1 %v1275_v7  ;;  %v1213_v7 = vld [vmem:[#allocation6 + $0x28] sm:$0xff]  ;;  %v1214_v2 = vld [vmem:[#allocation6 + $0x30] sm:$0xff] }
 0x36a   : > { %v2363_v10 = vpop.eup %2362  ;;  %v1236_v34 = vadd.f32 %v1201_v22, %v1200_v21  ;;  %2374 = vpow2.f32 %v1100_v20  ;;  %v2973_v48 = vpop.permute.xlu0 %1498  ;;  %v1221_v25 = vmul.f32 %v2897_v33, %v1213_v7 }
 0x36b   : > { %v2365_v35 = vpop.eup %2364  ;;  %v1202_v15 = vmul.f32 %v2363_v10, %v2917_v59 }
 0x36c   : > { %1237 = vadd.xlane.f32.xlu1 %v1236_v34  ;;  %v1203_v26 = vmul.f32 %v2365_v35, %v2915_v58 }
 0x36d   : > { %v1277_v28 = vpack.c.bf16 %v1202_v15, %v1200_v21 }
 0x36e   : > { %v2367_v36 = vpop.eup %2366  ;;  %v1278_v37 = vpack.c.bf16 %v1203_v26, %v1201_v22  ;;  %v1239_v38 = vadd.f32 %v1203_v26, %v1202_v15 }
 0x36f   : > { %v2369_v39 = vpop.eup %2368  ;;  %v1204_v40 = vmul.f32 %v2367_v36, %v2907_v49  ;;  %v1102_v49 = vmul.f32 1.442695, %v1087_v31  ;;  %v1211_v31 = vld [vmem:[#allocation6 + $0x18] sm:$0xff] }
 0x370   : > { %1425 = vmatprep.mubr.bf16.mxu1 %v1278_v37  ;;  %1240 = vadd.xlane.f32.xlu1 %v1239_v38  ;;  %v1205_v41 = vmul.f32 %v2369_v39, %v2911_v50 }
 0x371   : > { %1426 = vmatmul.mubr.bf16.gmra.mrb[8].mxu1 %v1277_v28  ;;  %2376 = vpow2.f32 %v1102_v49 }
 0x372   : > { %v2371_v42 = vpop.eup %2370  ;;  %v1242_v11 = vadd.f32 %v1205_v41, %v1204_v40 }
 0x373   : > { %v2373_v13 = vpop.eup %2372  ;;  %v1206_v43 = vmul.f32 %v2371_v42, %v2917_v59  ;;  %v1216_v59 = vmul.f32 %v2856_v56, %v1208_v47  ;;  %v1219_v56 = vmul.f32 %v2886_v30, %v1211_v31 }
 0x374   : > { %1243 = vadd.xlane.f32.xlu1 %v1242_v11  ;;  %v1207_v44 = vmul.f32 %v2373_v13, %v2915_v58  ;;  %v2375_v45 = vpop.eup %2374 }
 0x375   : > { %v1279_v61 = vpack.c.bf16 %v1206_v43, %v1204_v40  ;;  %v1222_v30 = vmul.f32 %v2375_v45, %v1214_v2 }
 0x376   : > { %1519 = vperm.xlu0 %2296, %v2375_v45   ;;  %v1280_v46 = vpack.c.bf16 %v1207_v44, %v1205_v41  ;;  %v1245_v62 = vadd.f32 %v1207_v44, %v1206_v43 }
 0x378   : > { %1433 = vmatprep.mubr.bf16.mxu1 %v1280_v46  ;;  %1246 = vadd.xlane.f32.xlu1 %v1245_v62  ;;  %v2070_v46 = vld [vmem:[%s3121_s6 + $0x3] ss:$0 sm:$0xff] }
 0x379   : > { %1434 = vmatmul.mubr.bf16.gmra.mrb[12].mxu1 %v1279_v61 }
 0x37b   : > { %v2377_v50 = vpop.eup %2376 }
 0x37c   : > { %v1223_v20 = vmul.f32 %v2377_v50, %v1215_v14 }
 0x389   : > { %1524 = vperm.xlu1 %2297, %v2377_v50  }
 0x3e9   : > { %v1226_v58 = vpop.xlane.xlu1 %1225 }
 0x3ea   : > { %v1248_v1 = vadd.f32 %v1226_v58, %v1216_v59 }
 0x3ec   : > { %1257 = vst.msk [vmem:[#allocation6] sm:$0xff] %vm724_vm1, %v1248_v1 }
 0x3ed   : > { %v1229_v52 = vpop.xlane.xlu0 %1228 }
 0x3ee   : > { %v1249_v53 = vadd.f32 %v1229_v52, %v1217_v51 }
 0x3f0   : > { %1258 = vst.msk [vmem:[#allocation6 + $0x8] sm:$0xff] %vm724_vm1, %v1249_v53 }
 0x3f1   : > { %v1232_v29 = vpop.xlane.xlu1 %1231 }
 0x3f2   : > { %v1250_v4 = vadd.f32 %v1232_v29, %v1218_v24 }
 0x3f4   : > { %1259 = vst.msk [vmem:[#allocation6 + $0x10] sm:$0xff] %vm724_vm1, %v1250_v4  ;;  %v1541_v4 = vld [vmem:[#allocation4] sm:$0xff] }
 0x3f5   : > { %v1235_v16 = vpop.xlane.xlu1 %1234  ;;  %v1520_v62 = vpop.permute.xlu0 %1519 }
 0x3f6   : > { %v1251_v54 = vadd.f32 %v1235_v16, %v1219_v56  ;;  %v1533_v58 = vmul.f32 %v2070_v46, %v1520_v62 }
 0x3f8   : > { %1260 = vst.msk [vmem:[#allocation6 + $0x18] sm:$0xff] %vm724_vm1, %v1251_v54  ;;  %v1537_v24 = vadd.f32 %v1533_v58, %v2961_v9 }
 0x3f9   : > { %v1238_v57 = vpop.xlane.xlu1 %1237 }
 0x3fa   : > { %v1252_v60 = vadd.f32 %v1238_v57, %v1220_v8  ;;  %v1543_v8 = vmul.f32 %v1541_v4, %v1537_v24 }
 0x3fc   : > { %1261 = vst.msk [vmem:[#allocation6 + $0x20] sm:$0xff] %vm724_vm1, %v1252_v60 }
 0x3fd   : > { %v1241_v0 = vpop.xlane.xlu1 %1240 }
 0x3fe   : > { %v1253_v6 = vadd.f32 %v1241_v0, %v1221_v25 }
 0x400   : > { %1262 = vst.msk [vmem:[#allocation6 + $0x28] sm:$0xff] %vm724_vm1, %v1253_v6 }
 0x401   : > { %v1244_v12 = vpop.xlane.xlu1 %1243 }
 0x402   : > { %v1254_v18 = vadd.f32 %v1244_v12, %v1222_v30 }
 0x404   : > { %1263 = vst.msk [vmem:[#allocation6 + $0x30] sm:$0xff] %vm724_vm1, %v1254_v18 }
 0x405   : > { %v1247_v32 = vpop.xlane.xlu1 %1246 }
 0x406   : > { %v1255_v19 = vadd.f32 %v1247_v32, %v1223_v20 }
 0x408   : > { %1264 = vst.msk [vmem:[#allocation6 + $0x38] sm:$0xff] %vm724_vm1, %v1255_v19 }
 0x409   : > { %v1525_v59 = vpop.permute.xlu1 %1524 }
 0x40a   : > { %v1534_v1 = vmul.f32 %v2070_v46, %v1525_v59 }
 0x434   : > { %v2140_v21 = vpop.f32.mrb[0].mxu1 }
 0x435   : > { %v2141_v22 = vpop.f32.mrb[1].mxu1 }
 0x436   : > { %v2142_v10 = vadd.f32 %v2141_v22, %v2140_v21  ;;  %v2143_v33 = vpop.f32.mrb[2].mxu1 }
 0x437   : > { %v2144_v34 = vpop.f32.mrb[3].mxu1 }
 0x438   : > { %v2145_v35 = vadd.f32 %v2144_v34, %v2143_v33  ;;  %v1461_v38 = vmul.f32 %v2142_v10, %v2926_v23 }
 0x43a   : > { %v1462_v41 = vmul.f32 %v2145_v35, %v2926_v23  ;;  %v1508_v23 = vmul.f32 %v2950_v55, %v2973_v48  ;;  %v1542_v48 = vld [vmem:[#allocation4 + $0x8] sm:$0xff] }
 0x43c   : > { %v2146_v15 = vpop.f32.mrb[4].mxu1  ;;  %v1512_v53 = vadd.f32 %v1508_v23, %v2953_v5 }
 0x43d   : > { %v2147_v26 = vpop.f32.mrb[5].mxu1 }
 0x43e   : > { %v2148_v28 = vadd.f32 %v2147_v26, %v2146_v15  ;;  %v2149_v36 = vpop.f32.mrb[6].mxu1  ;;  %v1538_v16 = vadd.f32 %v1534_v1, %v1512_v53 }
 0x43f   : > { %v2150_v37 = vpop.f32.mrb[7].mxu1 }
 0x440   : > { %v1483_v39 = vmul.f32 %v2148_v28, %v2933_v27  ;;  %v2151_v40 = vadd.f32 %v2150_v37, %v2149_v36 }
 0x442   : > { %v1487_v42 = vadd.f32 %v1483_v39, %v1461_v38  ;;  %v1484_v11 = vmul.f32 %v2151_v40, %v2933_v27 }
 0x444   : > { %v1488_v13 = vadd.f32 %v1484_v11, %v1462_v41  ;;  %v2152_v43 = vpop.f32.mrb[8].mxu1 }
 0x445   : > { %v2153_v44 = vpop.f32.mrb[9].mxu1 }
 0x446   : > { %v2154_v45 = vadd.f32 %v2153_v44, %v2152_v43  ;;  %v2155_v61 = vpop.f32.mrb[10].mxu1 }
 0x447   : > { %v2156_v49 = vpop.f32.mrb[11].mxu1 }
 0x448   : > { %v1509_v50 = vmul.f32 %v2154_v45, %v2950_v55  ;;  %v2157_v47 = vadd.f32 %v2156_v49, %v2155_v61 }
 0x44a   : > { %v1513_v27 = vadd.f32 %v1509_v50, %v1487_v42  ;;  %v1510_v63 = vmul.f32 %v2157_v47, %v2950_v55  ;;  %v1544_v55 = vmul.f32 %v1542_v48, %v1538_v16 }
 0x44c   : > { %v1514_v51 = vadd.f32 %v1510_v63, %v1488_v13  ;;  %v2158_v52 = vpop.f32.mrb[12].mxu1 }
 0x44d   : > { %v2159_v3 = vpop.f32.mrb[13].mxu1 }
 0x44e   : > { %v2160_v29 = vadd.f32 %v2159_v3, %v2158_v52  ;;  %v2161_v31 = vpop.f32.mrb[14].mxu1 }
 0x44f   : > { %v2162_v56 = vpop.f32.mrb[15].mxu1 }
 0x450   : > { %v1535_v17 = vmul.f32 %v2160_v29, %v2070_v46  ;;  %v2163_v54 = vadd.f32 %v2162_v56, %v2161_v31 }
 0x452   : > { %v1539_v57 = vadd.f32 %v1535_v17, %v1513_v27  ;;  %v1536_v7 = vmul.f32 %v2163_v54, %v2070_v46 }
 0x454   : > { %v1545_v60 = vadd.f32 %v1543_v8, %v1539_v57  ;;  %v1540_v25 = vadd.f32 %v1536_v7, %v1514_v51 }
 0x456   : > { %1547 = vst.msk [vmem:[#allocation4] sm:$0xff] %vm741_vm2, %v1545_v60  ;;  %v1546_v0 = vadd.f32 %v1544_v55, %v1540_v25 }
 0x458   : > { %1548 = vst.msk [vmem:[#allocation4 + $0x8] sm:$0xff] %vm741_vm2, %v1546_v0 }
 0x459 PF: > { %v1554_v5 = vld [vmem:[#allocation6 + $0x10] sm:$0xff]  ;;  %v1552_v9 = vld [vmem:[#allocation6] sm:$0xff]  ;;  %v1555_v2 = vld [vmem:[#allocation6 + $0x18] sm:$0xff]  ;;  %v2516_v6 = vmov 0   ;;  %p1672_p7 = scmp.eq.s32.totalorder %s2493_s16, 1 }
 0x45a   : > { %2379 = vset.pattern.permute.xlu1 %v2516_v6  ;;  %2378 = vset.pattern.permute.xlu0 %v2516_v6  ;;  %v1562_v30 = vmax.f32 %v1554_v5, 1e-30  ;;  %v1560_v12 = vmax.f32 %v1552_v9, 1e-30  ;;  %v1563_v14 = vmax.f32 %v1555_v2, 1e-30  ;;  %v1776_v25 = vlaneseq (%p1672_p7) }
 0x45b   : > { %v1553_v18 = vld [vmem:[#allocation6 + $0x8] sm:$0xff]  ;;  %v1556_v19 = vld [vmem:[#allocation6 + $0x20] sm:$0xff]  ;;  %v1559_v10 = vld [vmem:[#allocation6 + $0x38] sm:$0xff]  ;;  %v2517_v2 = vmov (%p1672_p7), 0   ;;  %s3158_s29 = sld [smem:[#allocation25_spill]] (%p1672_p7) }
 0x45c   : > { %v1557_v20 = vld [vmem:[#allocation6 + $0x28] sm:$0xff]  ;;  %2380 = vrcp.f32 %v1562_v30  ;;  %v1561_v32 = vmax.f32 %v1553_v18, 1e-30  ;;  %v1564_v22 = vmax.f32 %v1556_v19, 1e-30  ;;  %v1558_v33 = vld [vmem:[#allocation6 + $0x30] sm:$0xff] }
 0x45d   : > { %2382 = vrcp.f32 %v1560_v12  ;;  %v1565_v21 = vmax.f32 %v1557_v20, 1e-30  ;;  %v1567_v34 = vmax.f32 %v1559_v10, 1e-30  ;;  %v1566_v35 = vmax.f32 %v1558_v33, 1e-30 }
 0x45e   : > { %2384 = vrcp.f32 %v1563_v14  ;;  %v2073_v13 = vld [vmem:[%s3121_s6 + $0x1] ss:$0 sm:$0xff]  ;;  %v2071_v43 = vld [vmem:[%s3121_s6] ss:$0 sm:$0xff]  ;;  %v2075_v45 = vld [vmem:[%s3121_s6 + $0x2] ss:$0 sm:$0xff] }
 0x45f   : > { %2386 = vrcp.f32 %v1561_v32  ;;  %v2077_v58 = vld [vmem:[%s3121_s6 + $0x3] ss:$0 sm:$0xff]  ;;  %v1664_v24 = vld [vmem:[#allocation4 + $0x8] sm:$0xff]  ;;  %v1663_v4 = vld [vmem:[#allocation4] sm:$0xff]  ;;  %v1777_v12 = vshrl.u32 (%p1672_p7), %v1776_v25, 7 }
 0x460   : > { %2388 = vrcp.f32 %v1565_v21  ;;  %v1662_v56 = vld [vmem:[#allocation3 + $0x8] sm:$0xff]  ;;  %v1661_v54 = vld [vmem:[#allocation3] sm:$0xff]  ;;  %v1684_v60 = vld [vmem:[%s3124_s9 + $0x10] sm:$0xff] (%p1672_p7) }
 0x461   : > { %2390 = vrcp.f32 %v1564_v22  ;;  %v1682_v7 = vld [vmem:[%s3124_s9] sm:$0xff] (%p1672_p7)  ;;  %v1683_v55 = vld [vmem:[%s3124_s9 + $0x8] sm:$0xff] (%p1672_p7)  ;;  %v1685_v5 = vld [vmem:[%s3124_s9 + $0x18] sm:$0xff] (%p1672_p7)  ;;  %v1778_v20 = vsub.s32 (%p1672_p7), 0, %v1777_v12 }
 0x462   : > { %2392 = vrcp.f32 %v1567_v34  ;;  %v2200_v0 = vpack.c.bf16 (%p1672_p7), %v1683_v55, %v1682_v7  ;;  %v2204_v6 = vpack.c.bf16 (%p1672_p7), %v1685_v5, %v1684_v60  ;;  %v1677_v14 = vld [vmem:[#allocation9] sm:$0x1] (%p1672_p7) }
 0x463   : > { %2394 = vrcp.f32 %v1566_v35  ;;  %v1788_v32 = vsub.f32 (%p1672_p7), 1.0, %v1677_v14  ;;  %v1779_v19 = vrot.slane (%p1672_p7), %v1677_v14, %v1778_v20  ;;  %v2079_v33 = vld [vmem:[%s3125_s10] ss:$0 sm:$0xff] (%p1672_p7) }
 0x464   : > { %2201 = vmatprep.subr.bf16.mxu0 (%p1672_p7), %v2200_v0  ;;  %v1786_v35 = vld [vmem:[%s2675_s19] sm:$0xff] (%p1672_p7) }
 0x465   : > { %2203 = vmatpush3.bf16.msra.mxu0 (%p1672_p7), %v2200_v0  ;;  %v1793_v22 = vrot.slane (%p1672_p7), %v1788_v32, %v1778_v20 }
 0x466   : > { %v2381_v15 = vpop.eup %2380  ;;  %2205 = vmatprep.subr.bf16.mxu0 (%p1672_p7), %v2204_v6 }
 0x467   : > { %v2383_v26 = vpop.eup %2382  ;;  %1599 = vperm.xlu1 %2379, %v2381_v15  }
 0x468   : > { %v2385_v28 = vpop.eup %2384  ;;  %1579 = vperm.xlu0 %2378, %v2383_v26  }
 0x469   : > { %v2387_v36 = vpop.eup %2386  ;;  %2207 = vmatpush3.bf16.msra.mxu0 (%p1672_p7), %v2204_v6 }
 0x46a   : > { %v2389_v37 = vpop.eup %2388 }
 0x46b   : > { %1604 = vperm.xlu1 %2379, %v2385_v28   ;;  %v2391_v38 = vpop.eup %2390 }
 0x46c   : > { %1584 = vperm.xlu0 %2378, %v2387_v36   ;;  %v2393_v39 = vpop.eup %2392 }
 0x46d   : > { %v2395_v40 = vpop.eup %2394 }
 0x46f   : > { %1626 = vperm.xlu1 %2379, %v2389_v37   ;;  %v1787_v37 = vld [vmem:[%s2675_s19 + $0x8] sm:$0xff] (%p1672_p7) }
 0x470   : > { %1621 = vperm.xlu0 %2378, %v2391_v38  }
 0x473   : > { %1648 = vperm.xlu1 %2379, %v2393_v39  }
 0x474   : > { %1643 = vperm.xlu0 %2378, %v2395_v40  }
 0x478   : > { %2396 = vset.pattern.permute.xlu0 (%p1672_p7), %v2517_v2 }
 0x479   : > { %1781 = vperm.xlu0 (%p1672_p7), %2396, %v1779_v19  }
 0x47d   : > { %1795 = vperm.xlu0 (%p1672_p7), %2396, %v1793_v22  }
 0x4e6   : > { %v1600_v41 = vpop.permute.xlu1 %1599 }
 0x4e7   : > { %v1580_v42 = vpop.permute.xlu0 %1579  ;;  %v1613_v62 = vmul.f32 %v2073_v13, %v1600_v41 }
 0x4e8   : > { %v1593_v49 = vmul.f32 %v2071_v43, %v1580_v42 }
 0x4ea   : > { %v1605_v11 = vpop.permute.xlu1 %1604  ;;  %v1615_v63 = vadd.f32 %v1613_v62, %v1593_v49 }
 0x4eb   : > { %v1585_v44 = vpop.permute.xlu0 %1584  ;;  %v1614_v61 = vmul.f32 %v2073_v13, %v1605_v11 }
 0x4ec   : > { %v1594_v46 = vmul.f32 %v2071_v43, %v1585_v44 }
 0x4ee   : > { %v1627_v50 = vpop.permute.xlu1 %1626  ;;  %v1616_v27 = vadd.f32 %v1614_v61, %v1594_v46 }
 0x4ef   : > { %v1636_v47 = vmul.f32 %v2075_v45, %v1627_v50  ;;  %v1622_v59 = vpop.permute.xlu0 %1621 }
 0x4f0   : > { %v1635_v23 = vmul.f32 %v2075_v45, %v1622_v59 }
 0x4f1   : > { %v1638_v51 = vadd.f32 %v1636_v47, %v1616_v27 }
 0x4f2   : > { %v1649_v1 = vpop.permute.xlu1 %1648  ;;  %v1637_v53 = vadd.f32 %v1635_v23, %v1615_v63 }
 0x4f3   : > { %v1658_v52 = vmul.f32 %v2077_v58, %v1649_v1  ;;  %v1644_v3 = vpop.permute.xlu0 %1643 }
 0x4f4   : > { %v1657_v29 = vmul.f32 %v2077_v58, %v1644_v3 }
 0x4f5   : > { %v1660_v31 = vadd.f32 %v1658_v52, %v1638_v51 }
 0x4f6   : > { %v1659_v16 = vadd.f32 %v1657_v29, %v1637_v53  ;;  %1676 = sbr.rel (!%p1672_p7) target bundleno = 1824 (0x720), region = 88  ;;  %v2082_v53 = vld [vmem:[%s3126_s11] ss:$0 sm:$0xff] (%p1672_p7) }
 0x4f7   : > { %v1666_v17 = vmul.f32 %v1664_v24, %v1660_v31  ;;  %v2083_v29 = vld [vmem:[%s3158_s29] ss:$0 sm:$0xff] (%p1672_p7) }
 0x4f8   : > { %v1665_v48 = vmul.f32 %v1663_v4, %v1659_v16  ;;  %v1782_v10 = vpop.permute.xlu0 (%p1672_p7), %1781 }
 0x4f9   : > { %v1668_v8 = vadd.f32 %v1666_v17, %v1662_v56 }
 0x4fa   : > { %v1667_v57 = vadd.f32 %v1665_v48, %v1661_v54 }
 0x4fb   : > { %1671 = vst.msk [vmem:[#allocation3 + $0x8] sm:$0xff] %vm741_vm2, %v1668_v8 }
 0x4fc   : > { %1670 = vst.msk [vmem:[#allocation3] sm:$0xff] %vm741_vm2, %v1667_v57  ;;  %v1796_v15 = vpop.permute.xlu0 (%p1672_p7), %1795 }
 0x4fd   : > { %v1798_v38 = vmul.f32 %v1796_v15, %v1786_v35  ;;  %v1799_v41 = vmul.f32 %v1796_v15, %v1787_v37 }
 0x502   : > { %v1679_v18 = vld [vmem:[#allocation3 + $0x8] sm:$0xff] }
 0x503   : > { %v1678_v9 = vld [vmem:[#allocation3] sm:$0xff]  ;;  %v1681_v21 = vmul.f32 0.5, %v1679_v18 }
 0x504   : > { %v1680_v30 = vmul.f32 0.5, %v1678_v9 }
 0x506   : > { %2189 = vmatprep.mubr.msk.f32.mxu0 %vm741_vm2, %v1680_v30 }
 0x507   : > { %2190 = vmatmul.mubr.msk.f32.vlgmr.msra.gmra.mrb[0].mxu0 %vm741_vm2, %v1681_v21 }
 0x5da   : > { %v2191_v34 = vpop.f32.mrb[0].mxu0 }
 0x5db   : > { %v1772_v26 = vadd.f32 %v2191_v34, %v2079_v33  ;;  %v1766_v28 = vpop.f32.mrb[1].mxu0 }
 0x5dc   : > { %v1767_v36 = vadd.f32 %v2079_v33, %v1766_v28 }
 0x5dd   : > { %v1785_v39 = vmul.f32 %v1782_v10, %v1772_v26 }
 0x5de   : > { %v1784_v40 = vmul.f32 %v1782_v10, %v1767_v36 }
 0x5df   : > { %v1801_v13 = vadd.f32 %v1799_v41, %v1785_v39 }
 0x5e0   : > { %v1800_v42 = vadd.f32 %v1798_v38, %v1784_v40 }
 0x5e1   : > { %v1805_v43 = vsel %vm741_vm2, %v1801_v13, 0.0 }
 0x5e2   : > { %v1802_v11 = vsel %vm741_vm2, %v1800_v42, 0.0 }
 0x5e3   : > { %1803 = vadd.xlane.f32.xlu1 %v1802_v11 }
 0x5e7   : > { %1806 = vadd.xlane.f32.xlu1 %v1805_v43 }
 0x670   : > { %v1804_v44 = vpop.xlane.xlu1 %1803 }
 0x671   : > { %v1809_v45 = vmul.f32 0.03125, %v1804_v44 }
 0x673   : > { %v1811_v61 = vsub.f32 %v1800_v42, %v1809_v45 }
 0x674   : > { %v1807_v46 = vpop.xlane.xlu1 %1806 }
 0x675   : > { %v1810_v62 = vmul.f32 0.03125, %v1807_v46  ;;  %v1813_v49 = vmul.f32 %v1811_v61, %v1811_v61 }
 0x677   : > { %v1812_v50 = vsub.f32 %v1801_v13, %v1810_v62  ;;  %v1815_v47 = vsel %vm741_vm2, %v1813_v49, 0.0 }
 0x678   : > { %1816 = vadd.xlane.f32.xlu0 %v1815_v47 }
 0x679   : > { %v1814_v59 = vmul.f32 %v1812_v50, %v1812_v50 }
 0x67b   : > { %v1818_v23 = vsel %vm741_vm2, %v1814_v59, 0.0 }
 0x67c   : > { %1819 = vadd.xlane.f32.xlu1 %v1818_v23 }
 0x705   : > { %v1817_v58 = vpop.xlane.xlu0 %1816 }
 0x706   : > { %v1821_v27 = vmul.f32 0.03125, %v1817_v58 }
 0x708   : > { %v1823_v63 = vadd.f32 1e-05, %v1821_v27 }
 0x709   : > { %v1820_v1 = vpop.xlane.xlu1 %1819 }
 0x70a   : > { %2397 = vrsqrt.f32 %v1823_v63  ;;  %v1822_v51 = vmul.f32 0.03125, %v1820_v1 }
 0x70c   : > { %v1824_v52 = vadd.f32 1e-05, %v1822_v51 }
 0x70e   : > { %2399 = vrsqrt.f32 %v1824_v52 }
 0x714   : > { %v2398_v3 = vpop.eup %2397 }
 0x715   : > { %v1827_v24 = vmul.f32 %v2398_v3, %v1811_v61 }
 0x717   : > { %v1836_v31 = vmul.f32 %v2082_v53, %v1827_v24 }
 0x718   : > { %v2400_v4 = vpop.eup %2399 }
 0x719   : > { %v1845_v56 = vadd.f32 %v2083_v29, %v1836_v31  ;;  %v1828_v16 = vmul.f32 %v2400_v4, %v1812_v50 }
 0x71b   : > { %1847 = vst.msk [vmem:[%s2693_s27] sm:$0xff] %vm741_vm2, %v1845_v56  ;;  %v1837_v17 = vmul.f32 %v2082_v53, %v1828_v16 }
 0x71d   : > { %v1846_v54 = vadd.f32 %v2083_v29, %v1837_v17 }
 0x71f   : > { %1848 = vst.msk [vmem:[%s2693_s27 + $0x8] sm:$0xff] %vm741_vm2, %v1846_v54 }
 0x720 PF: > { %s3159_s0 = sld [smem:[#allocation15_spill]]  ;;  %s2093_s13 = sshll.u32 %s2497_s17, 8 }
 0x721   : > { %s3161_s26 = sld [smem:[#allocation26_spill]]  ;;  %s1863_s24 = sshll.u32 %s2693_s27, 4  ;;  %s3060_s24 = int_to_ptr.vmem [resolvable:$true] %s1863_s24 }
 0x722   : > { %s2413_s25 = scalar_lea.vmem %s3060_s24, 256  ;;  %s2518_s17 = smov [#allocation10]  }
 0x723   : > { %p2414_p9 = scmp.ne.s32.totalorder %s3060_s24, %s2413_s25  ;;  %s2417_s21 = sshll.u32 %s2518_s17, 4  ;;  %s2418_s21 = int_to_ptr.vmem [resolvable:$false] %s2417_s21 }
 0x724   : > { %s2419_s16 = scalar_lea.vmem %s2418_s21, 512  ;;  %p2420_p12 = scmp.lt.s32.totalorder %s3060_s24, %s2418_s21 }
 0x725   : > { %p2415_p10 = pnand %p2414_p9, %p2646_p8  ;;  %p2421_p13 = scmp.lt.s32.totalorder %s2419_s16, %s2413_s25 }
 0x726   : > { %s3162_s15 = sand.u32 1, %s3159_s0  }
 0x727   : > { %s3057_s30 = scalar_lea.hbm %s3161_s26, %s2093_s13  ;;  %s3064_s23 = scalar_lea.sflag [#allocation11], %s3162_s15 }
 0x728   : > { %p2416_p11 = pneg %p2415_p10  ;;  %p2422_p1 = por %p2421_p13, %p2420_p12 }
 0x72a   : > { %p2423_p2 = pnand %p2422_p1, %p2416_p11 }
 0x72c   : > { %2426 = shalt.err (!%p2423_p2)
}
 0x72d   : > { %s2427_s27 = scalar_lea.hbm %s3057_s30, 256  ;;  %s2431_s28 = scalar_lea.hbm %s3161_s26, 512 }
 0x72e   : > { %p2428_p3 = scmp.ne.s32.totalorder %s3057_s30, %s2427_s27  ;;  %p2432_p6 = scmp.lt.u32.totalorder %s3057_s30, %s3161_s26 }
 0x72f   : > { %p2433_p7 = scmp.lt.u32.totalorder %s2431_s28, %s2427_s27  ;;  %p2435_p10 = scmp.lt.u32.totalorder %s2427_s27, %s3057_s30 }
 0x730   : > { %p2429_p4 = pnand %p2428_p3, %p2646_p8 }
 0x731   : > { %p2434_p9 = por %p2433_p7, %p2432_p6 }
 0x732   : > { %p2430_p5 = pneg %p2429_p4 }
 0x733   : > { %p2436_p11 = por %p2435_p10, %p2434_p9 }
 0x735   : > { %p2437_p12 = pnand %p2436_p11, %p2430_p5 }
 0x737   : > { %2440 = shalt.err (!%p2437_p12)
}
 0x738   : > { %s2519_s29 = smov 128   ;;  %s2520_s0 = smov 8  }
 0x739   : > { %2216 = dma.vmem_to_hbm [thread:$0]  (%p2646_p8), %s3060_s24, 256, %s3057_s30, %s3064_s23, %s2519_s29, %s2519_s29, %s2520_s0  }
 0x73a PF: > { %s3163_s13 = sld [smem:[#allocation19_spill]]  ;;  %s3164_s20 = sld [smem:[#allocation14_spill]] }
 0x740   : > { %p2222_p13 = scmp.ge.s32.totalorder %s3163_s13, 2  ;;  %s1878_s15 = sand.u32 1, %s3164_s20  }
 0x741   : > { %s1879_s25 = scalar_lea.sflag [#allocation11], %s1878_s15 }
 0x742   : > { %p2219_p1 = pnand %p2222_p13, %p2656_p0 }
 0x744   : > { %2476 = dma.done.wait (!%p2219_p1), %s1879_s25, 256  }
 0x745   : > { %2478 = vsyncadd (!%p2219_p1), %s1879_s25, 4294967040  ;;  %s34_s20 = sadd.s32 1, %s3163_s13   ;;  %s3166_s0 = sld [smem:[#allocation15_spill]] }
 0x746   : > { %p31_p2 = scmp.ge.s32.totalorder %s34_s20, 6   ;;  %s3167_s15 = sld [smem:[#allocation16_spill]] }
 0x747   : > { %s3168_s1 = sld [smem:[#allocation24_spill]]  ;;  %s3169_s16 = sld [smem:[#allocation17_spill]] }
 0x748   : > { %s3170_s17 = sld [smem:[#allocation18_spill]]  ;;  %s3171_s18 = sld [smem:[#allocation20_spill]] }
 0x749   : > { %s3172_s19 = sld [smem:[#allocation22_spill]]  ;;  %33 = sbr.rel (!%p31_p2) target bundleno = 21 (0x15), region = 141 }
 0x750   :  { %1884 = vsyncpa [#allocation11], 1 }
 0x751   :  { %1886 = vsyncpa [#allocation11 + $0x1], 1 }

</bundles_post_ra>
